<compile_context>
chip_gen: v7x
topology: tpu7x:2x2x1
jax: 0.10.0
libtpu: 0.0.40
codegen_flags: <defaults>
</compile_context>

<pallas_src>
import math

import jax
import jax.numpy as jnp
from jax.experimental import pallas as pl
from jax.experimental.pallas import tpu as pltpu


_BN_EPS = 1e-3                     # BatchNorm2d eps used by YOLOX BaseConv
_SQRT_2_OVER_PI = 0.7978845608028654


def _gelu(x):
    # tanh-approximate GELU computed in f32 (VPU + EUP tanh).
    # TODO(synk): torch nn.GELU() defaults to the exact erf form (~1e-3 abs
    # difference); switch to lax.erf once its Mosaic lowering is guaranteed.
    return 0.5 * x * (1.0 + jnp.tanh(_SQRT_2_OVER_PI * (x + 0.044715 * x * x * x)))


def _round_up(a, b):
    return (a + b - 1) // b * b


def _vmem_limit_bytes(stream_tiles, const_tiles):
    """Explicit scoped-VMEM budget: double-buffered streamed tiles + constants,
    with headroom; floor 32 MiB, cap 60 MiB (below v7x's 64 MiB physical)."""
    need = 2 * sum(stream_tiles) + 2 * sum(const_tiles)
    return int(min(max(need + (4 << 20), 32 << 20), 60 << 20))


# -----------------------------------------------------------------------------
# Pallas kernels
# -----------------------------------------------------------------------------
def _conv1_pool_kernel(x_ref, w_ref, shift_ref, act_ref, psum_ref):
    """act = GELU(W_fused @ x + shift) ; per-tile channel-sum for the pool.

    x_ref: (Cin, tn) f32   w_ref: (C1, Cin) bf16   shift_ref: (C1, 1) f32
    act_ref: (C1, tn) bf16 psum_ref: (C1, 1) f32 (per-(b,m) partial sum)
    """
    xb = x_ref[...].astype(jnp.bfloat16)                               # in-kernel cast
    acc = jnp.dot(w_ref[...], xb, preferred_element_type=jnp.float32)  # (C1, tn) MXU
    act = _gelu(acc + shift_ref[...])                                  # f32 epilogue
    act_ref[...] = act.astype(act_ref.dtype)                           # bf16 store
    psum_ref[...] = jnp.sum(act, axis=1, keepdims=True)                # XLU lane-reduce


def _se_fc_kernel(p_ref, w1_ref, w2_ref, y_ref):
    """y = sigmoid(relu(mean @ W1) @ W2)  -- the squeeze/excite MLP (tiny)."""
    h = jnp.dot(p_ref[...], w1_ref[...], preferred_element_type=jnp.float32)
    h = jnp.maximum(h, 0.0)                                            # ReLU
    s = jnp.dot(h, w2_ref[...], preferred_element_type=jnp.float32)
    y_ref[...] = jax.nn.sigmoid(s)                                     # Sigmoid


def _scale_conv2_kernel(act_ref, y_ref, w_ref, shift_ref, o_ref):
    """out = GELU(W_fused @ (act * y_b) + shift)  -- SE re-scale fused into conv2.

    act_ref: (C1, tn) bf16  y_ref: (C1, 1) f32  w_ref: (C2, C1) bf16
    shift_ref: (C2, 1) f32  o_ref: (C2, tn) f32
    """
    xs = act_ref[...] * y_ref[...].astype(jnp.bfloat16)                # bf16 lane-broadcast
    acc = jnp.dot(w_ref[...], xs, preferred_element_type=jnp.float32)  # (C2, tn) MXU
    o_ref[...] = _gelu(acc + shift_ref[...]).astype(o_ref.dtype)       # f32 NCHW output


# -----------------------------------------------------------------------------
# Parameter construction (deterministic; mirrors the PyTorch module shapes)
# -----------------------------------------------------------------------------
def _make_conv_bn_params(key, cin, cout):
    # PyTorch Conv2d weight (cout, cin, 1, 1) squeezed to (cout, cin).
    w = jax.random.normal(key, (cout, cin), jnp.float32) * (1.0 / math.sqrt(cin))
    gamma = jnp.ones((cout,), jnp.float32)
    beta = jnp.zeros((cout,), jnp.float32)
    mean = jnp.zeros((cout,), jnp.float32)
    var = jnp.ones((cout,), jnp.float32)
    scale = gamma / jnp.sqrt(var + _BN_EPS)
    shift = beta - mean * scale
    # Fold BN scale into the weight rows; kernel epilogue is `acc + shift`.
    w_fused = (w * scale[:, None]).astype(jnp.bfloat16)
    return w_fused, shift.reshape(cout, 1).astype(jnp.float32)


def init_se_attention(key, channel, out_channel, reduction):
    hidden = max(channel // reduction, 1)
    k1, k2, k3, k4 = jax.random.split(key, 4)
    fc1 = jax.random.normal(k3, (channel, hidden), jnp.float32) * (1.0 / math.sqrt(channel))
    fc2 = jax.random.normal(k4, (hidden, channel), jnp.float32) * (1.0 / math.sqrt(hidden))
    return {
        'conv1': _make_conv_bn_params(k1, channel, channel),       # BaseConv 1x1
        'conv2': _make_conv_bn_params(k2, channel, out_channel),   # BaseConv 1x1
        'fc1': fc1,                                                # Linear (no bias)
        'fc2': fc2,                                                # Linear (no bias)
    }


# -----------------------------------------------------------------------------
# Forward pass
# -----------------------------------------------------------------------------
def se_attention_fwd(x_nchw, params, tn_target=None):
    B, Cin, H, W = x_nchw.shape
    hw = H * W

    w1, b1 = params['conv1']          # (C1, Cin) bf16, (C1, 1) f32
    w2, b2 = params['conv2']          # (C2, C1)  bf16, (C2, 1) f32
    fc1, fc2 = params['fc1'], params['fc2']
    C1, C2, Ch = w1.shape[0], w2.shape[0], fc1.shape[1]

    # --- spatial (lane-axis) tiling: minimal padding, v7x-aware tile size ----
    if tn_target is None:
        tn_target = 512 if max(Cin, C1, C2) <= 512 else 256
    n_m = pl.cdiv(hw, tn_target)
    tn = _round_up(pl.cdiv(hw, n_m), 128)      # lane granularity
    hwp = n_m * tn

    x = x_nchw.reshape(B, Cin, hw)             # zero-copy NCHW flatten
    if hwp != hw:
        x = jnp.pad(x, ((0, 0), (0, 0), (0, hwp - hw)))

    # --- conv1 (1x1 Conv + folded BN + GELU) fused with per-tile pool sums ---
    conv1_cost = pl.CostEstimate(
        flops=2 * B * hwp * Cin * C1,
        transcendentals=B * hwp * C1,
        bytes_accessed=(B * Cin * hwp * 4 + Cin * C1 * 2 + C1 * 4
                        + B * C1 * hwp * 2 + B * n_m * C1 * 4))
    vmem1 = _vmem_limit_bytes([Cin * tn * 4, C1 * tn * 2, C1 * 4],
                              [Cin * C1 * 2, C1 * 4])
    act, psum = pl.pallas_call(
        _conv1_pool_kernel,
        out_shape=(jax.ShapeDtypeStruct((B, C1, hwp), jnp.bfloat16),
                   jax.ShapeDtypeStruct((B, n_m, C1, 1), jnp.float32)),
        grid=(B, n_m),
        in_specs=[
            pl.BlockSpec((None, Cin, tn), lambda b, m: (b, 0, m)),
            pl.BlockSpec((C1, Cin), lambda b, m: (0, 0)),
            pl.BlockSpec((C1, 1), lambda b, m: (0, 0)),
        ],
        out_specs=(
            pl.BlockSpec((None, C1, tn), lambda b, m: (b, 0, m)),
            pl.BlockSpec((None, None, C1, 1), lambda b, m: (b, m, 0, 0)),
        ),
        compiler_params=pltpu.CompilerParams(
            dimension_semantics=("parallel", "parallel"),
            vmem_limit_bytes=vmem1),
        cost_estimate=conv1_cost,
    )(x, w1, b1)

    # --- global average pool (tiny cross-tile reduction in the wrapper) ------
    chan_sum = jnp.sum(psum, axis=1)                       # (B, C1, 1)
    if hwp != hw:
        # zero-padded lanes produced exactly GELU(shift) per channel.
        chan_sum = chan_sum - (hwp - hw) * _gelu(b1)
    pooled = (chan_sum * (1.0 / hw)).reshape(B, C1)        # true mean over H*W

    # --- squeeze-excite MLP on the pooled means (single tiny block) ----------
    y_se = pl.pallas_call(
        _se_fc_kernel,
        out_shape=jax.ShapeDtypeStruct((B, C1), jnp.float32),
        in_specs=[pl.BlockSpec((B, C1), lambda: (0, 0)),
                  pl.BlockSpec((C1, Ch), lambda: (0, 0)),
                  pl.BlockSpec((Ch, C1), lambda: (0, 0))],
        out_specs=pl.BlockSpec((B, C1), lambda: (0, 0)),
    )(pooled, fc1, fc2)
    y_col = y_se.reshape(B, C1, 1)                         # channels on sublanes

    # --- channel re-scale fused with conv2 (1x1 Conv + folded BN + GELU) -----
    conv2_cost = pl.CostEstimate(
        flops=2 * B * hwp * C1 * C2 + B * hwp * C1,
        transcendentals=B * hwp * C2,
        bytes_accessed=(B * C1 * hwp * 2 + B * C1 * 4 + C1 * C2 * 2 + C2 * 4
                        + B * C2 * hwp * 4))
    vmem2 = _vmem_limit_bytes([C1 * tn * 2, C2 * tn * 4],
                              [C1 * C2 * 2, C2 * 4, C1 * 4])
    out = pl.pallas_call(
        _scale_conv2_kernel,
        out_shape=jax.ShapeDtypeStruct((B, C2, hwp), jnp.float32),
        grid=(B, n_m),
        in_specs=[
            pl.BlockSpec((None, C1, tn), lambda b, m: (b, 0, m)),
            pl.BlockSpec((None, C1, 1), lambda b, m: (b, 0, 0)),
            pl.BlockSpec((C2, C1), lambda b, m: (0, 0)),
            pl.BlockSpec((C2, 1), lambda b, m: (0, 0)),
        ],
        out_specs=pl.BlockSpec((None, C2, tn), lambda b, m: (b, 0, m)),
        compiler_params=pltpu.CompilerParams(
            dimension_semantics=("parallel", "parallel"),
            vmem_limit_bytes=vmem2),
        cost_estimate=conv2_cost,
    )(act, y_col, w2, b2)

    if hwp != hw:
        out = out[:, :, :hw]
    return out.reshape(B, C2, H, W)                        # already NCHW


# -----------------------------------------------------------------------------
if __name__ == "__main__":
    key = jax.random.PRNGKey(0)
    k_param, k_data = jax.random.split(key)

    # Small shapes consistent with the module (channel must be >= reduction).
    B, C, H, W = 2, 128, 16, 16
    out_channel, reduction = 128, 16

    params = init_se_attention(k_param, C, out_channel, reduction)
    x = jax.random.normal(k_data, (B, C, H, W), jnp.float32)   # NCHW, like PyTorch

    fwd = jax.jit(se_attention_fwd)
    out = fwd(x, params)
    jax.block_until_ready(out)

    assert out.shape == (B, out_channel, H, W), out.shape
    assert out.dtype == jnp.float32
    assert bool(jnp.all(jnp.isfinite(out)))
    print("KERNEL_OK")
</pallas_src>

<mosaic_0001>
module attributes {stable_mosaic.version = 11 : i64} {
  func.func @_conv1_pool_kernel(%arg0: i32, %arg1: i32, %arg2: memref<1x128x256xf32, #tpu.memory_space<vmem>>, %arg3: memref<128x128xbf16, #tpu.memory_space<vmem>>, %arg4: memref<128x1xf32, #tpu.memory_space<vmem>>, %arg5: memref<1x128x256xbf16, #tpu.memory_space<vmem>>, %arg6: memref<1x1x128x1xf32, #tpu.memory_space<vmem>>) attributes {dimension_semantics = [#tpu.dimension_semantics<parallel>, #tpu.dimension_semantics<parallel>], iteration_bounds = array<i64: 2, 1>, scalar_prefetch = 0 : i64, scratch_operands = 0 : i64, tpu.core_type = #tpu.core_type<tc>, window_params = [{transform_indices = @transform_0, window_bounds = array<i64: 1, 128, 256>}, {pipeline_mode = #tpu.pipeline_mode<synchronous>, transform_indices = @transform_1, window_bounds = array<i64: 128, 128>}, {pipeline_mode = #tpu.pipeline_mode<synchronous>, transform_indices = @transform_2, window_bounds = array<i64: 128, 1>}, {transform_indices = @transform_3, window_bounds = array<i64: 1, 128, 256>}, {transform_indices = @transform_4, window_bounds = array<i64: 1, 1, 128, 1>}]} {
    %c0 = arith.constant 0 : index
    %c0_0 = arith.constant 0 : index
    %c0_1 = arith.constant 0 : index
    %0 = vector.load %arg2[%c0, %c0_0, %c0_1] : memref<1x128x256xf32, #tpu.memory_space<vmem>>, vector<1x128x256xf32>
    %1 = vector.shape_cast %0 : vector<1x128x256xf32> to vector<128x256xf32>
    %2 = arith.truncf %1 : vector<128x256xf32> to vector<128x256xbf16>
    %c0_2 = arith.constant 0 : index
    %c0_3 = arith.constant 0 : index
    %3 = vector.load %arg3[%c0_2, %c0_3] : memref<128x128xbf16, #tpu.memory_space<vmem>>, vector<128x128xbf16>
    %cst = arith.constant dense<0.000000e+00> : vector<128x256xf32>
    %4 = tpu.matmul %3, %2, %cst {dimension_numbers = #tpu.dot_dimension_numbers<[1], [0], [0], [1], [0, 0, 1, 1], [], []>} : vector<128x128xbf16>, vector<128x256xbf16>, vector<128x256xf32> -> vector<128x256xf32>
    %c0_4 = arith.constant 0 : index
    %c0_5 = arith.constant 0 : index
    %5 = vector.load %arg4[%c0_4, %c0_5] : memref<128x1xf32, #tpu.memory_space<vmem>>, vector<128x1xf32>
    %6 = vector.broadcast %5 : vector<128x1xf32> to vector<128x256xf32>
    %7 = arith.addf %4, %6 : vector<128x256xf32>
    %cst_6 = arith.constant 5.000000e-01 : f32
    %8 = vector.broadcast %cst_6 : f32 to vector<128x256xf32>
    %9 = arith.mulf %8, %7 : vector<128x256xf32>
    %cst_7 = arith.constant 4.471500e-02 : f32
    %10 = vector.broadcast %cst_7 : f32 to vector<128x256xf32>
    %11 = arith.mulf %10, %7 : vector<128x256xf32>
    %12 = arith.mulf %11, %7 : vector<128x256xf32>
    %13 = arith.mulf %12, %7 : vector<128x256xf32>
    %14 = arith.addf %7, %13 : vector<128x256xf32>
    %cst_8 = arith.constant 0.797884583 : f32
    %15 = vector.broadcast %cst_8 : f32 to vector<128x256xf32>
    %16 = arith.mulf %15, %14 : vector<128x256xf32>
    %17 = math.tanh %16 : vector<128x256xf32>
    %cst_9 = arith.constant 1.000000e+00 : f32
    %18 = vector.broadcast %cst_9 : f32 to vector<128x256xf32>
    %19 = arith.addf %18, %17 : vector<128x256xf32>
    %20 = arith.mulf %9, %19 : vector<128x256xf32>
    %21 = arith.truncf %20 : vector<128x256xf32> to vector<128x256xbf16>
    %c0_10 = arith.constant 0 : index
    %c0_11 = arith.constant 0 : index
    %c0_12 = arith.constant 0 : index
    %22 = vector.load %arg5[%c0_10, %c0_11, %c0_12] : memref<1x128x256xbf16, #tpu.memory_space<vmem>>, vector<1x128x256xbf16>
    %23 = vector.shape_cast %22 : vector<1x128x256xbf16> to vector<128x256xbf16>
    %24 = vector.shape_cast %21 : vector<128x256xbf16> to vector<1x128x256xbf16>
    tpu.vector_store %arg5[%c0_10, %c0_11, %c0_12], %24 {strides = array<i32>} : memref<1x128x256xbf16, #tpu.memory_space<vmem>>, vector<1x128x256xbf16>,
    %cst_13 = arith.constant dense<0.000000e+00> : vector<128xf32>
    %25 = vector.multi_reduction <add>, %20, %cst_13 [1] : vector<128x256xf32> to vector<128xf32>
    %26 = vector.shape_cast %25 : vector<128xf32> to vector<128x1xf32>
    %c0_14 = arith.constant 0 : index
    %c0_15 = arith.constant 0 : index
    %c0_16 = arith.constant 0 : index
    %c0_17 = arith.constant 0 : index
    %27 = vector.load %arg6[%c0_14, %c0_15, %c0_16, %c0_17] : memref<1x1x128x1xf32, #tpu.memory_space<vmem>>, vector<1x1x128x1xf32>
    %28 = vector.shape_cast %27 : vector<1x1x128x1xf32> to vector<128x1xf32>
    %29 = vector.shape_cast %26 : vector<128x1xf32> to vector<1x1x128x1xf32>
    tpu.vector_store %arg6[%c0_14, %c0_15, %c0_16, %c0_17], %29 {strides = array<i32>} : memref<1x1x128x1xf32, #tpu.memory_space<vmem>>, vector<1x1x128x1xf32>,
    return
  }
  func.func @transform_0(%arg0: i32, %arg1: i32) -> (i32, i32, i32) {
    %c0_i32 = arith.constant 0 : i32
    %c0_i32_0 = arith.constant 0 : i32
    return %arg0, %c0_i32, %arg1 : i32, i32, i32
  }
  func.func @transform_1(%arg0: i32, %arg1: i32) -> (i32, i32) {
    %c0_i32 = arith.constant 0 : i32
    %c0_i32_0 = arith.constant 0 : i32
    %c0_i32_1 = arith.constant 0 : i32
    return %c0_i32, %c0_i32_0 : i32, i32
  }
  func.func @transform_2(%arg0: i32, %arg1: i32) -> (i32, i32) {
    %c0_i32 = arith.constant 0 : i32
    %c0_i32_0 = arith.constant 0 : i32
    %c0_i32_1 = arith.constant 0 : i32
    return %c0_i32, %c0_i32_0 : i32, i32
  }
  func.func @transform_3(%arg0: i32, %arg1: i32) -> (i32, i32, i32) {
    %c0_i32 = arith.constant 0 : i32
    %c0_i32_0 = arith.constant 0 : i32
    return %arg0, %c0_i32, %arg1 : i32, i32, i32
  }
  func.func @transform_4(%arg0: i32, %arg1: i32) -> (i32, i32, i32, i32) {
    %c0_i32 = arith.constant 0 : i32
    %c0_i32_0 = arith.constant 0 : i32
    %c0_i32_1 = arith.constant 0 : i32
    return %arg0, %arg1, %c0_i32, %c0_i32_0 : i32, i32, i32, i32
  }
}

module attributes {stable_mosaic.version = 11 : i64} {
  func.func @_se_fc_kernel(%arg0: memref<2x128xf32, #tpu.memory_space<vmem>>, %arg1: memref<128x8xf32, #tpu.memory_space<vmem>>, %arg2: memref<8x128xf32, #tpu.memory_space<vmem>>, %arg3: memref<2x128xf32, #tpu.memory_space<vmem>>) attributes {dimension_semantics = [], scalar_prefetch = 0 : i64, scratch_operands = 0 : i64, tpu.core_type = #tpu.core_type<tc>} {
    %c0 = arith.constant 0 : index
    %c0_0 = arith.constant 0 : index
    %0 = vector.load %arg0[%c0, %c0_0] : memref<2x128xf32, #tpu.memory_space<vmem>>, vector<2x128xf32>
    %c0_1 = arith.constant 0 : index
    %c0_2 = arith.constant 0 : index
    %1 = vector.load %arg1[%c0_1, %c0_2] : memref<128x8xf32, #tpu.memory_space<vmem>>, vector<128x8xf32>
    %cst = arith.constant dense<0.000000e+00> : vector<2x8xf32>
    %2 = tpu.matmul %0, %1, %cst {dimension_numbers = #tpu.dot_dimension_numbers<[1], [0], [0], [1], [0, 0, 1, 1], [], []>} : vector<2x128xf32>, vector<128x8xf32>, vector<2x8xf32> -> vector<2x8xf32>
    %cst_3 = arith.constant 0.000000e+00 : f32
    %3 = vector.broadcast %cst_3 : f32 to vector<2x8xf32>
    %4 = arith.maximumf %2, %3 : vector<2x8xf32>
    %c0_4 = arith.constant 0 : index
    %c0_5 = arith.constant 0 : index
    %5 = vector.load %arg2[%c0_4, %c0_5] : memref<8x128xf32, #tpu.memory_space<vmem>>, vector<8x128xf32>
    %cst_6 = arith.constant dense<0.000000e+00> : vector<2x128xf32>
    %6 = tpu.matmul %4, %5, %cst_6 {dimension_numbers = #tpu.dot_dimension_numbers<[1], [0], [0], [1], [0, 0, 1, 1], [], []>} : vector<2x8xf32>, vector<8x128xf32>, vector<2x128xf32> -> vector<2x128xf32>
    %7 = arith.negf %6 : vector<2x128xf32>
    %8 = math.exp %7 : vector<2x128xf32>
    %cst_7 = arith.constant 1.000000e+00 : f32
    %9 = vector.broadcast %cst_7 : f32 to vector<2x128xf32>
    %10 = arith.addf %9, %8 : vector<2x128xf32>
    %11 = arith.divf %9, %10 : vector<2x128xf32>
    %c0_8 = arith.constant 0 : index
    %c0_9 = arith.constant 0 : index
    %12 = vector.load %arg3[%c0_8, %c0_9] : memref<2x128xf32, #tpu.memory_space<vmem>>, vector<2x128xf32>
    tpu.vector_store %arg3[%c0_8, %c0_9], %11 {strides = array<i32>} : memref<2x128xf32, #tpu.memory_space<vmem>>, vector<2x128xf32>,
    return
  }
}

module attributes {stable_mosaic.version = 11 : i64} {
  func.func @_scale_conv2_kernel(%arg0: i32, %arg1: i32, %arg2: memref<1x128x256xbf16, #tpu.memory_space<vmem>>, %arg3: memref<1x128x1xf32, #tpu.memory_space<vmem>>, %arg4: memref<128x128xbf16, #tpu.memory_space<vmem>>, %arg5: memref<128x1xf32, #tpu.memory_space<vmem>>, %arg6: memref<1x128x256xf32, #tpu.memory_space<vmem>>) attributes {dimension_semantics = [#tpu.dimension_semantics<parallel>, #tpu.dimension_semantics<parallel>], iteration_bounds = array<i64: 2, 1>, scalar_prefetch = 0 : i64, scratch_operands = 0 : i64, tpu.core_type = #tpu.core_type<tc>, window_params = [{transform_indices = @transform_0, window_bounds = array<i64: 1, 128, 256>}, {transform_indices = @transform_1, window_bounds = array<i64: 1, 128, 1>}, {pipeline_mode = #tpu.pipeline_mode<synchronous>, transform_indices = @transform_2, window_bounds = array<i64: 128, 128>}, {pipeline_mode = #tpu.pipeline_mode<synchronous>, transform_indices = @transform_3, window_bounds = array<i64: 128, 1>}, {transform_indices = @transform_4, window_bounds = array<i64: 1, 128, 256>}]} {
    %c0 = arith.constant 0 : index
    %c0_0 = arith.constant 0 : index
    %c0_1 = arith.constant 0 : index
    %0 = vector.load %arg2[%c0, %c0_0, %c0_1] : memref<1x128x256xbf16, #tpu.memory_space<vmem>>, vector<1x128x256xbf16>
    %1 = vector.shape_cast %0 : vector<1x128x256xbf16> to vector<128x256xbf16>
    %c0_2 = arith.constant 0 : index
    %c0_3 = arith.constant 0 : index
    %c0_4 = arith.constant 0 : index
    %2 = vector.load %arg3[%c0_2, %c0_3, %c0_4] : memref<1x128x1xf32, #tpu.memory_space<vmem>>, vector<1x128x1xf32>
    %3 = vector.shape_cast %2 : vector<1x128x1xf32> to vector<128x1xf32>
    %4 = arith.truncf %3 : vector<128x1xf32> to vector<128x1xbf16>
    %5 = vector.broadcast %4 : vector<128x1xbf16> to vector<128x256xbf16>
    %6 = arith.mulf %1, %5 : vector<128x256xbf16>
    %c0_5 = arith.constant 0 : index
    %c0_6 = arith.constant 0 : index
    %7 = vector.load %arg4[%c0_5, %c0_6] : memref<128x128xbf16, #tpu.memory_space<vmem>>, vector<128x128xbf16>
    %cst = arith.constant dense<0.000000e+00> : vector<128x256xf32>
    %8 = tpu.matmul %7, %6, %cst {dimension_numbers = #tpu.dot_dimension_numbers<[1], [0], [0], [1], [0, 0, 1, 1], [], []>} : vector<128x128xbf16>, vector<128x256xbf16>, vector<128x256xf32> -> vector<128x256xf32>
    %c0_7 = arith.constant 0 : index
    %c0_8 = arith.constant 0 : index
    %9 = vector.load %arg5[%c0_7, %c0_8] : memref<128x1xf32, #tpu.memory_space<vmem>>, vector<128x1xf32>
    %10 = vector.broadcast %9 : vector<128x1xf32> to vector<128x256xf32>
    %11 = arith.addf %8, %10 : vector<128x256xf32>
    %cst_9 = arith.constant 5.000000e-01 : f32
    %12 = vector.broadcast %cst_9 : f32 to vector<128x256xf32>
    %13 = arith.mulf %12, %11 : vector<128x256xf32>
    %cst_10 = arith.constant 4.471500e-02 : f32
    %14 = vector.broadcast %cst_10 : f32 to vector<128x256xf32>
    %15 = arith.mulf %14, %11 : vector<128x256xf32>
    %16 = arith.mulf %15, %11 : vector<128x256xf32>
    %17 = arith.mulf %16, %11 : vector<128x256xf32>
    %18 = arith.addf %11, %17 : vector<128x256xf32>
    %cst_11 = arith.constant 0.797884583 : f32
    %19 = vector.broadcast %cst_11 : f32 to vector<128x256xf32>
    %20 = arith.mulf %19, %18 : vector<128x256xf32>
    %21 = math.tanh %20 : vector<128x256xf32>
    %cst_12 = arith.constant 1.000000e+00 : f32
    %22 = vector.broadcast %cst_12 : f32 to vector<128x256xf32>
    %23 = arith.addf %22, %21 : vector<128x256xf32>
    %24 = arith.mulf %13, %23 : vector<128x256xf32>
    %c0_13 = arith.constant 0 : index
    %c0_14 = arith.constant 0 : index
    %c0_15 = arith.constant 0 : index
    %25 = vector.load %arg6[%c0_13, %c0_14, %c0_15] : memref<1x128x256xf32, #tpu.memory_space<vmem>>, vector<1x128x256xf32>
    %26 = vector.shape_cast %25 : vector<1x128x256xf32> to vector<128x256xf32>
    %27 = vector.shape_cast %24 : vector<128x256xf32> to vector<1x128x256xf32>
    tpu.vector_store %arg6[%c0_13, %c0_14, %c0_15], %27 {strides = array<i32>} : memref<1x128x256xf32, #tpu.memory_space<vmem>>, vector<1x128x256xf32>,
    return
  }
  func.func @transform_0(%arg0: i32, %arg1: i32) -> (i32, i32, i32) {
    %c0_i32 = arith.constant 0 : i32
    %c0_i32_0 = arith.constant 0 : i32
    return %arg0, %c0_i32, %arg1 : i32, i32, i32
  }
  func.func @transform_1(%arg0: i32, %arg1: i32) -> (i32, i32, i32) {
    %c0_i32 = arith.constant 0 : i32
    %c0_i32_0 = arith.constant 0 : i32
    %c0_i32_1 = arith.constant 0 : i32
    return %arg0, %c0_i32, %c0_i32_0 : i32, i32, i32
  }
  func.func @transform_2(%arg0: i32, %arg1: i32) -> (i32, i32) {
    %c0_i32 = arith.constant 0 : i32
    %c0_i32_0 = arith.constant 0 : i32
    %c0_i32_1 = arith.constant 0 : i32
    return %c0_i32, %c0_i32_0 : i32, i32
  }
  func.func @transform_3(%arg0: i32, %arg1: i32) -> (i32, i32) {
    %c0_i32 = arith.constant 0 : i32
    %c0_i32_0 = arith.constant 0 : i32
    %c0_i32_1 = arith.constant 0 : i32
    return %c0_i32, %c0_i32_0 : i32, i32
  }
  func.func @transform_4(%arg0: i32, %arg1: i32) -> (i32, i32, i32) {
    %c0_i32 = arith.constant 0 : i32
    %c0_i32_0 = arith.constant 0 : i32
    return %arg0, %c0_i32, %arg1 : i32, i32, i32
  }
}

</mosaic_0001>

<bundles_post_ra>
// kernel: se_attention_fwd.4
= control target key start
LH: loop header
LB: loop body
LE: loop exit
PB: predicated region body
PF: predicated region fallthrough
CT: control target
= control target key end

     0   :  { %v280_v0 = vmov 0.0|0.0   ;;  %vm281_vm0 = vmmov 0   ;;  %v282_v4 = vmov 0.0   ;;  %vm103_vm1 = vcmask 64512   ;;  %s360_s1 = inlined_call_operand.vmem [shape: f32[128,8], index: 1, kind: input, shape index: {}]   ;;  %s361_s0 = inlined_call_operand.vmem [shape: f32[2,128], index: 0, kind: input, shape index: {}]   ;;  %s362_s2 = inlined_call_operand.vmem [shape: f32[8,128], index: 2, kind: input, shape index: {}]   ;;  %s363_s3 = inlined_call_operand.vmem [shape: f32[2,128], index: 3, kind: output, shape index: {}]  }
   0x1   :  { %249 = vmatprep.subr.bf16.mxu0 %v280_v0  ;;  %v15_v1 = vld [vmem:[%s360_s1] sm:$0xff]  ;;  %v16_v2 = vld [vmem:[%s360_s1 + $0x8] sm:$0xff]  ;;  %v17_v3 = vld [vmem:[%s360_s1 + $0x10] sm:$0xff]  ;;  %241 = vmatprep.mubr.msk.f32.mxu0 %vm281_vm0, %v282_v4 }
   0x2   :  { %v250_v5 = vpack.c.bf16 %v16_v2, %v15_v1  ;;  %v18_v6 = vld [vmem:[%s360_s1 + $0x18] sm:$0xff]  ;;  %244 = vmatprep.subr.mxu1 %v282_v4  ;;  %246 = vmatprep.mubr.msk.f32.mxu1 %vm281_vm0, %v282_v4  ;;  %v19_v8 = vld [vmem:[%s360_s1 + $0x20] sm:$0xff]  ;;  %v20_v9 = vld [vmem:[%s360_s1 + $0x28] sm:$0xff] }
   0x3   :  { %v253_v7 = vpack.c.bf16 %v18_v6, %v17_v3  ;;  %v256_v10 = vpack.c.bf16 %v20_v9, %v19_v8  ;;  %v21_v11 = vld [vmem:[%s360_s1 + $0x30] sm:$0xff]  ;;  %v22_v12 = vld [vmem:[%s360_s1 + $0x38] sm:$0xff]  ;;  %v23_v14 = vld [vmem:[%s360_s1 + $0x40] sm:$0xff] }
   0x4   :  { %251 = vmatpush3.bf16.msra.mxu0 %v250_v5  ;;  %v259_v13 = vpack.c.bf16 %v22_v12, %v21_v11  ;;  %v24_v15 = vld [vmem:[%s360_s1 + $0x48] sm:$0xff]  ;;  %v25_v17 = vld [vmem:[%s360_s1 + $0x50] sm:$0xff]  ;;  %v26_v18 = vld [vmem:[%s360_s1 + $0x58] sm:$0xff] }
   0x5   :  { %252 = vmatprep.subr.bf16.mxu0 %v280_v0  ;;  %v262_v16 = vpack.c.bf16 %v24_v15, %v23_v14  ;;  %v265_v19 = vpack.c.bf16 %v26_v18, %v25_v17  ;;  %v27_v20 = vld [vmem:[%s360_s1 + $0x60] sm:$0xff]  ;;  %v28_v21 = vld [vmem:[%s360_s1 + $0x68] sm:$0xff]  ;;  %v29_v23 = vld [vmem:[%s360_s1 + $0x70] sm:$0xff] }
   0x6   :  { %v268_v22 = vpack.c.bf16 %v28_v21, %v27_v20  ;;  %v30_v24 = vld [vmem:[%s360_s1 + $0x78] sm:$0xff]  ;;  %v14_v26 = vld [vmem:[%s361_s0] sm:$0x3] }
   0x7   :  { %v271_v25 = vpack.c.bf16 %v30_v24, %v29_v23  ;;  %v102_v27 = vld [vmem:[%s362_s2] sm:$0xff] }
   0x8   :  { %254 = vmatpush3.bf16.msra.mxu0 %v253_v7  ;;  %245 = vmatpush3.msra.mxu1 %v102_v27 }
   0x9   :  { %255 = vmatprep.subr.bf16.mxu0 %v280_v0 }
   0xc   :  { %257 = vmatpush3.bf16.msra.mxu0 %v256_v10 }
   0xd   :  { %258 = vmatprep.subr.bf16.mxu0 %v280_v0 }
  0x10   :  { %260 = vmatpush3.bf16.msra.mxu0 %v259_v13 }
  0x11   :  { %261 = vmatprep.subr.bf16.mxu0 %v280_v0 }
  0x14   :  { %263 = vmatpush3.bf16.msra.mxu0 %v262_v16 }
  0x15   :  { %264 = vmatprep.subr.bf16.mxu0 %v280_v0 }
  0x18   :  { %266 = vmatpush3.bf16.msra.mxu0 %v265_v19 }
  0x19   :  { %267 = vmatprep.subr.bf16.mxu0 %v280_v0 }
  0x1c   :  { %269 = vmatpush3.bf16.msra.mxu0 %v268_v22 }
  0x1d   :  { %270 = vmatprep.subr.bf16.mxu0 %v280_v0 }
  0x20   :  { %272 = vmatpush3.bf16.msra.mxu0 %v271_v25 }
  0x23   :  { %242 = vmatmul.mubr.f32.vlgmr.msra.gmra.mrb[0].mxu0 %v14_v26 }
  0xf6   :  { %v97_v28 = vpop.f32.mrb[0].mxu0 }
  0xf7   :  { %v101_v29 = vmax.f32 %v97_v28, 0.0  ;;  %v243_v30 = vpop.f32.mrb[1].mxu0 }
  0xf9   :  { %247 = vmatmul.mubr.msk.f32.vlgmr.msra.gmra.mrb[0].mxu1 %vm103_vm1, %v101_v29 }
 0x1cc   :  { %v173_v31 = vpop.f32.mrb[0].mxu1 }
 0x1cd   :  { %v189_v32 = vmul.f32 -1.442695, %v173_v31  ;;  %v248_v33 = vpop.f32.mrb[1].mxu1 }
 0x1cf   :  { %276 = vpow2.f32 %v189_v32 }
 0x1d9   :  { %v277_v34 = vpop.eup %276 }
 0x1da   :  { %v180_v35 = vadd.f32 1.0, %v277_v34 }
 0x1dc   :  { %278 = vrcp.f32 %v180_v35 }
 0x1e6   :  { %v279_v36 = vpop.eup %278 }
 0x1e7   :  { %183 = vst [vmem:[%s363_s3] sm:$0x3] %v279_v36 }

// kernel: se_attention_fwd.3
= control target key start
LH: loop header
LB: loop body
LE: loop exit
PB: predicated region body
PF: predicated region fallthrough
CT: control target
= control target key end

     0   :  { %s1408_s15 = smov 0   ;;  %s1410_s16 = smov 0   ;;  %s1952_s0 = inlined_call_operand.vmem [shape: f32[2,128,256], index: 0, kind: input, shape index: {}]   ;;  %s1953_s1 = inlined_call_operand.vmem [shape: bf16[128,128], index: 1, kind: input, shape index: {}]   ;;  %s1954_s2 = inlined_call_operand.vmem [shape: f32[128,1], index: 2, kind: input, shape index: {}]   ;;  %s1955_s3 = inlined_call_operand.vmem [shape: bf16[2,128,256], index: 3, kind: output, shape index: {0}]   ;;  %s1956_s4 = inlined_call_operand.vmem [shape: f32[2,1,128,1], index: 4, kind: output, shape index: {1}]  }
   0x1   :  { %s1412_s17 = smov 0  }
   0x2 LB: > { %s27_s18 = sadd.s32 1, %s1376_s16  ;;  %p1191_p0 = scmp.ge.s32.totalorder %s1380_s17, 1  ;;  %s1380_s17 = sphi %s1412_s17, %s15_s17   ;;  %s1376_s16 = sphi %s1410_s16, %s1976_s16   ;;  %s1372_s15 = sphi %s1408_s15, %s1975_s15  }
   0x3   : > { %p29_p1 = scmp.ge.s32.totalorder %s27_s18, 2  ;;  %p188_p2 = scmp.lt.s32.totalorder %s1380_s17, 3 }
   0x5   : > { %s1978_s18 = smov (%p29_p1, %s27_s18), 0  ;;  %p189_p3 = pnand %p1191_p0, %p188_p2 }
   0x7   : > { %192 = sbr.rel (%p189_p3) target bundleno = 509 (0x1fd), region = 32 }
   0xe   : > { %p232_p4 = scmp.lt.s32.totalorder %s1372_s15, 1  ;;  %v1382_v0 = vmov 0   ;;  %v327_v30 = vld [vmem:[%s1954_s2 + $0x10] sm:$0xff]  ;;  %v325_v31 = vld [vmem:[%s1954_s2] sm:$0xff]  ;;  %v328_v34 = vld [vmem:[%s1954_s2 + $0x18] sm:$0xff]  ;;  %vm1030_vm0 = vcmask 7168  }
   0xf   : > { %501 = vmatprep.mubr.bf16.mxu0 %v1382_v0  ;;  %541 = vmatprep.mubr.bf16.mxu1 %v1382_v0  ;;  %v326_v35 = vld [vmem:[%s1954_s2 + $0x8] sm:$0xff]  ;;  %v329_v43 = vld [vmem:[%s1954_s2 + $0x20] sm:$0xff]  ;;  %v332_v50 = vld [vmem:[%s1954_s2 + $0x38] sm:$0xff] }
  0x10   : > { %s1980_s15 = smov (!%p232_p4, %s1372_s15), 1  ;;  %1285 = vset.pattern.permute.xlu1 %v1382_v0  ;;  %1284 = vset.pattern.permute.xlu0 %v1382_v0  ;;  %v330_v42 = vld [vmem:[%s1954_s2 + $0x28] sm:$0xff]  ;;  %v331_v51 = vld [vmem:[%s1954_s2 + $0x30] sm:$0xff]  ;;  %v333_v57 = vld [vmem:[%s1954_s2 + $0x40] sm:$0xff] }
  0x11   : > { %s1224_s19 = sshll.u32 %s1980_s15, 8  ;;  %353 = vperm.xlu1 %1285, %v327_v30   ;;  %343 = vperm.xlu0 %1284, %v325_v31   ;;  %v334_v56 = vld [vmem:[%s1954_s2 + $0x48] sm:$0xff]  ;;  %v1286_v59 = vld [vmem:[%s1953_s1] sm:$0xff]   ;;  %v336_v61 = vld [vmem:[%s1954_s2 + $0x58] sm:$0xff]  ;;  %s1225_s27 = sshll.u32 %s1980_s15, 7 }
  0x12   : > { %s1436_s22 = scalar_lea.vmem %s1952_s0, %s1224_s19  ;;  %v1287_v60 = vld [vmem:[%s1953_s1 + $0x20] sm:$0xff]   ;;  %v335_v62 = vld [vmem:[%s1954_s2 + $0x50] sm:$0xff]  ;;  %v338_v63 = vld [vmem:[%s1954_s2 + $0x68] sm:$0xff]  ;;  %s1760_s30 = scalar_lea.vmem %s1955_s3, %s1225_s27 }
  0x13   : > { %v262_v1 = vld [vmem:[%s1436_s22 + $0x8] sm:$0xff]  ;;  %v264_v2 = vld [vmem:[%s1436_s22 + $0x18] sm:$0xff]  ;;  %v261_v3 = vld [vmem:[%s1436_s22] sm:$0xff]  ;;  %s1909_s7 = scalar_lea.vmem %s1956_s4, %s1225_s27 }
  0x14   : > { %v294_v4 = vpack.c.bf16 %v264_v2, %v262_v1  ;;  %v263_v5 = vld [vmem:[%s1436_s22 + $0x10] sm:$0xff]  ;;  %v266_v6 = vld [vmem:[%s1436_s22 + $0x28] sm:$0xff]  ;;  %v268_v7 = vld [vmem:[%s1436_s22 + $0x38] sm:$0xff] }
  0x15   : > { %v293_v8 = vpack.c.bf16 %v263_v5, %v261_v3  ;;  %v296_v9 = vpack.c.bf16 %v268_v7, %v266_v6  ;;  %v265_v10 = vld [vmem:[%s1436_s22 + $0x20] sm:$0xff]  ;;  %v267_v11 = vld [vmem:[%s1436_s22 + $0x30] sm:$0xff]  ;;  %v270_v12 = vld [vmem:[%s1436_s22 + $0x48] sm:$0xff]  ;;  %358 = vperm.xlu1 %1285, %v328_v34   ;;  %348 = vperm.xlu0 %1284, %v326_v35  }
  0x16   : > { %469 = vmatprep.subr.bf16.mxu0 %v294_v4  ;;  %1243 = vmatprep.subr.bf16.mxu1 %v294_v4  ;;  %v272_v13 = vld [vmem:[%s1436_s22 + $0x58] sm:$0xff]  ;;  %v295_v14 = vpack.c.bf16 %v267_v11, %v265_v10  ;;  %v269_v16 = vld [vmem:[%s1436_s22 + $0x40] sm:$0xff]  ;;  %v271_v17 = vld [vmem:[%s1436_s22 + $0x50] sm:$0xff] }
  0x17   : > { %470 = vmatpush1.bf16.msra.mxu0 %v293_v8  ;;  %1251 = vmatpush1.bf16.msra.mxu1 %v293_v8  ;;  %v298_v15 = vpack.c.bf16 %v272_v13, %v270_v12  ;;  %v274_v18 = vld [vmem:[%s1436_s22 + $0x68] sm:$0xff]  ;;  %v276_v19 = vld [vmem:[%s1436_s22 + $0x78] sm:$0xff]  ;;  %v297_v20 = vpack.c.bf16 %v271_v17, %v269_v16  ;;  %v273_v22 = vld [vmem:[%s1436_s22 + $0x60] sm:$0xff] }
  0x18   : > { %471 = vmatprep.subr.bf16.mxu0 %v296_v9  ;;  %1244 = vmatprep.subr.bf16.mxu1 %v296_v9  ;;  %v300_v21 = vpack.c.bf16 %v276_v19, %v274_v18  ;;  %v275_v23 = vld [vmem:[%s1436_s22 + $0x70] sm:$0xff]  ;;  %v278_v24 = vld [vmem:[%s1436_s22 + $0x88] sm:$0xff]  ;;  %v280_v25 = vld [vmem:[%s1436_s22 + $0x98] sm:$0xff] }
  0x19   : > { %v299_v26 = vpack.c.bf16 %v275_v23, %v273_v22  ;;  %v277_v27 = vld [vmem:[%s1436_s22 + $0x80] sm:$0xff]  ;;  %v302_v28 = vpack.c.bf16 %v280_v25, %v278_v24  ;;  %v279_v29 = vld [vmem:[%s1436_s22 + $0x90] sm:$0xff]  ;;  %v282_v32 = vld [vmem:[%s1436_s22 + $0xa8] sm:$0xff]  ;;  %368 = vperm.xlu1 %1285, %v330_v42   ;;  %363 = vperm.xlu0 %1284, %v329_v43  }
  0x1a   : > { %v284_v33 = vld [vmem:[%s1436_s22 + $0xb8] sm:$0xff]  ;;  %v301_v36 = vpack.c.bf16 %v279_v29, %v277_v27  ;;  %v281_v38 = vld [vmem:[%s1436_s22 + $0xa0] sm:$0xff]  ;;  %v283_v39 = vld [vmem:[%s1436_s22 + $0xb0] sm:$0xff] }
  0x1b   : > { %472 = vmatpush1.bf16.msra.mxu0 %v295_v14  ;;  %1252 = vmatpush1.bf16.msra.mxu1 %v295_v14  ;;  %v304_v37 = vpack.c.bf16 %v284_v33, %v282_v32  ;;  %v286_v40 = vld [vmem:[%s1436_s22 + $0xc8] sm:$0xff]  ;;  %v288_v41 = vld [vmem:[%s1436_s22 + $0xd8] sm:$0xff]  ;;  %v303_v44 = vpack.c.bf16 %v283_v39, %v281_v38  ;;  %v285_v46 = vld [vmem:[%s1436_s22 + $0xc0] sm:$0xff] }
  0x1c   : > { %473 = vmatprep.subr.bf16.mxu0 %v298_v15  ;;  %1245 = vmatprep.subr.bf16.mxu1 %v298_v15  ;;  %v306_v45 = vpack.c.bf16 %v288_v41, %v286_v40  ;;  %v287_v47 = vld [vmem:[%s1436_s22 + $0xd0] sm:$0xff]  ;;  %v290_v48 = vld [vmem:[%s1436_s22 + $0xe8] sm:$0xff]  ;;  %v292_v49 = vld [vmem:[%s1436_s22 + $0xf8] sm:$0xff] }
  0x1d   : > { %v305_v52 = vpack.c.bf16 %v287_v47, %v285_v46  ;;  %v308_v53 = vpack.c.bf16 %v292_v49, %v290_v48  ;;  %v289_v54 = vld [vmem:[%s1436_s22 + $0xe0] sm:$0xff]  ;;  %v291_v55 = vld [vmem:[%s1436_s22 + $0xf0] sm:$0xff]  ;;  %378 = vperm.xlu1 %1285, %v332_v50   ;;  %373 = vperm.xlu0 %1284, %v331_v51   ;;  %v1288_v2 = vld [vmem:[%s1953_s1 + $0x8] sm:$0xff]  }
  0x1e   : > { %v307_v58 = vpack.c.bf16 %v291_v55, %v289_v54  ;;  %v337_v1 = vld [vmem:[%s1954_s2 + $0x60] sm:$0xff]  ;;  %v1289_v3 = vld [vmem:[%s1953_s1 + $0x28] sm:$0xff]   ;;  %v340_v4 = vld [vmem:[%s1954_s2 + $0x78] sm:$0xff] }
  0x1f   : > { %474 = vmatpush1.bf16.msra.mxu0 %v297_v20  ;;  %1253 = vmatpush1.bf16.msra.mxu1 %v297_v20  ;;  %v339_v5 = vld [vmem:[%s1954_s2 + $0x70] sm:$0xff]  ;;  %v1292_v8 = vld [vmem:[%s1953_s1 + $0x18] sm:$0xff]  }
  0x20   : > { %475 = vmatprep.subr.bf16.mxu0 %v300_v21  ;;  %1246 = vmatprep.subr.bf16.mxu1 %v300_v21  ;;  %v1290_v6 = vld [vmem:[%s1953_s1 + $0x10] sm:$0xff]   ;;  %v1293_v9 = vld [vmem:[%s1953_s1 + $0x38] sm:$0xff]  }
  0x21   : > { %388 = vperm.xlu1 %1285, %v334_v56   ;;  %383 = vperm.xlu0 %1284, %v333_v57   ;;  %v1291_v7 = vld [vmem:[%s1953_s1 + $0x30] sm:$0xff]  }
  0x23   : > { %476 = vmatpush1.bf16.msra.mxu0 %v299_v26  ;;  %1254 = vmatpush1.bf16.msra.mxu1 %v299_v26 }
  0x24   : > { %477 = vmatprep.subr.bf16.mxu0 %v302_v28  ;;  %1247 = vmatprep.subr.bf16.mxu1 %v302_v28 }
  0x25   : > { %398 = vperm.xlu1 %1285, %v336_v61   ;;  %393 = vperm.xlu0 %1284, %v335_v62  }
  0x27   : > { %478 = vmatpush1.bf16.msra.mxu0 %v301_v36  ;;  %1255 = vmatpush1.bf16.msra.mxu1 %v301_v36 }
  0x28   : > { %479 = vmatprep.subr.bf16.mxu0 %v304_v37  ;;  %1248 = vmatprep.subr.bf16.mxu1 %v304_v37 }
  0x29   : > { %408 = vperm.xlu1 %1285, %v338_v63   ;;  %403 = vperm.xlu0 %1284, %v337_v1  }
  0x2b   : > { %480 = vmatpush1.bf16.msra.mxu0 %v303_v44  ;;  %1256 = vmatpush1.bf16.msra.mxu1 %v303_v44 }
  0x2c   : > { %481 = vmatprep.subr.bf16.mxu0 %v306_v45  ;;  %1249 = vmatprep.subr.bf16.mxu1 %v306_v45 }
  0x2d   : > { %418 = vperm.xlu1 %1285, %v340_v4   ;;  %413 = vperm.xlu0 %1284, %v339_v5  }
  0x2f   : > { %482 = vmatpush1.bf16.msra.mxu0 %v305_v52  ;;  %1257 = vmatpush1.bf16.msra.mxu1 %v305_v52 }
  0x30   : > { %483 = vmatprep.subr.bf16.mxu0 %v308_v53  ;;  %1250 = vmatprep.subr.bf16.mxu1 %v308_v53 }
  0x33   : > { %484 = vmatpush1.bf16.msra.mxu0 %v307_v58  ;;  %1258 = vmatpush1.bf16.msra.mxu1 %v307_v58 }
  0x36   : > { %502 = vmatmul.mubr.bf16.vlgmr.msra.gmra.mrb[0].mxu0 %v1286_v59  ;;  %542 = vmatmul.mubr.bf16.vlgmr.msra.gmra.mrb[0].mxu1 %v1287_v60 }
  0x37   : > { %511 = vmatprep.mubr.bf16.mxu0 %v1382_v0  ;;  %551 = vmatprep.mubr.bf16.mxu1 %v1382_v0 }
  0x3e   : > { %512 = vmatmul.mubr.bf16.gmra.mrb[4].mxu0 %v1288_v2  ;;  %552 = vmatmul.mubr.bf16.gmra.mrb[4].mxu1 %v1289_v3 }
  0x3f   : > { %521 = vmatprep.mubr.bf16.mxu0 %v1382_v0  ;;  %561 = vmatprep.mubr.bf16.mxu1 %v1382_v0 }
  0x46   : > { %522 = vmatmul.mubr.bf16.gmra.mrb[8].mxu0 %v1290_v6  ;;  %562 = vmatmul.mubr.bf16.gmra.mrb[8].mxu1 %v1291_v7 }
  0x47   : > { %531 = vmatprep.mubr.bf16.mxu0 %v1382_v0  ;;  %571 = vmatprep.mubr.bf16.mxu1 %v1382_v0 }
  0x4e   : > { %532 = vmatmul.mubr.bf16.gmra.mrb[12].mxu0 %v1292_v8  ;;  %572 = vmatmul.mubr.bf16.gmra.mrb[12].mxu1 %v1293_v9 }
  0x90   : > { %v354_v10 = vpop.permute.xlu1 %353  ;;  %v344_v11 = vpop.permute.xlu0 %343 }
  0x94   : > { %v1548_v12 = vpop.permute.xlu1 %358  ;;  %v349_v13 = vpop.permute.xlu0 %348 }
  0x98   : > { %v1550_v14 = vpop.permute.xlu1 %368  ;;  %v1552_v15 = vpop.permute.xlu0 %363 }
  0x9c   : > { %v1554_v0 = vpop.permute.xlu1 %378  ;;  %v1556_v16 = vpop.permute.xlu0 %373 }
  0xa0   : > { %v389_v17 = vpop.permute.xlu1 %388  ;;  %v384_v18 = vpop.permute.xlu0 %383 }
  0xa4   : > { %v399_v41 = vpop.permute.xlu1 %398  ;;  %v394_v42 = vpop.permute.xlu0 %393 }
 0x109   : > { %v503_v19 = vpop.f32.mrb[0].mxu0  ;;  %v543_v20 = vpop.f32.mrb[0].mxu1 }
 0x10a   : > { %v1558_v21 = vadd.f32 %v503_v19, %v344_v11  ;;  %v544_v22 = vadd.f32 %v543_v20, %v384_v18  ;;  %v505_v23 = vpop.f32.mrb[1].mxu0  ;;  %v545_v24 = vpop.f32.mrb[1].mxu1 }
 0x10b   : > { %v1560_v25 = vadd.f32 %v505_v23, %v344_v11  ;;  %v546_v26 = vadd.f32 %v545_v24, %v384_v18  ;;  %v507_v27 = vpop.f32.mrb[2].mxu0  ;;  %v547_v28 = vpop.f32.mrb[2].mxu1 }
 0x10c   : > { %v630_v29 = vmul.f32 0.044715, %v544_v22  ;;  %v1562_v30 = vadd.f32 %v507_v27, %v349_v13  ;;  %v1564_v31 = vadd.f32 %v547_v28, %v389_v17  ;;  %v509_v32 = vpop.f32.mrb[3].mxu0  ;;  %v549_v33 = vpop.f32.mrb[3].mxu1  ;;  %v614_v35 = vmul.f32 0.044715, %v1558_v21 }
 0x10d   : > { %v631_v34 = vmul.f32 0.044715, %v546_v26  ;;  %v1567_v37 = vadd.f32 %v509_v32, %v349_v13  ;;  %v615_v38 = vmul.f32 0.044715, %v1560_v25  ;;  %v1570_v40 = vadd.f32 %v549_v33, %v389_v17  ;;  %v409_v20 = vpop.permute.xlu1 %408 }
 0x10e   : > { %v662_v36 = vmul.f32 %v630_v29, %v544_v22  ;;  %v616_v43 = vmul.f32 0.044715, %v1562_v30  ;;  %v632_v44 = vmul.f32 0.044715, %v1564_v31  ;;  %v646_v49 = vmul.f32 %v614_v35, %v1558_v21 }
 0x10f   : > { %v663_v39 = vmul.f32 %v631_v34, %v546_v26  ;;  %v617_v50 = vmul.f32 0.044715, %v1567_v37  ;;  %v647_v55 = vmul.f32 %v615_v38, %v1560_v25  ;;  %v633_v56 = vmul.f32 0.044715, %v1570_v40 }
 0x110   : > { %v694_v47 = vmul.f32 %v662_v36, %v544_v22  ;;  %v1587_v61 = vmul.f32 %v616_v43, %v1562_v30  ;;  %v1590_v62 = vmul.f32 %v632_v44, %v1564_v31  ;;  %v1597_v7 = vmul.f32 0.5, %v544_v22 }
 0x111   : > { %v513_v45 = vpop.f32.mrb[4].mxu0  ;;  %v553_v46 = vpop.f32.mrb[4].mxu1  ;;  %v695_v48 = vmul.f32 %v663_v39, %v546_v26  ;;  %v1600_v8 = vmul.f32 %v617_v50, %v1567_v37  ;;  %v1605_v11 = vmul.f32 0.5, %v546_v26  ;;  %v1608_v13 = vmul.f32 %v633_v56, %v1570_v40 }
 0x112   : > { %v1576_v51 = vadd.f32 %v513_v45, %v354_v10  ;;  %v1578_v52 = vadd.f32 %v553_v46, %v394_v42  ;;  %v515_v53 = vpop.f32.mrb[5].mxu0  ;;  %v555_v54 = vpop.f32.mrb[5].mxu1  ;;  %v726_v2 = vadd.f32 %v694_v47, %v544_v22  ;;  %v1612_v18 = vmul.f32 0.5, %v1558_v21 }
 0x113   : > { %v1582_v57 = vadd.f32 %v515_v53, %v354_v10  ;;  %v1584_v58 = vadd.f32 %v555_v54, %v394_v42  ;;  %v517_v59 = vpop.f32.mrb[6].mxu0  ;;  %v557_v60 = vpop.f32.mrb[6].mxu1  ;;  %v727_v3 = vadd.f32 %v695_v48, %v546_v26  ;;  %v1615_v19 = vmul.f32 0.5, %v1560_v25 }
 0x114   : > { %v519_v63 = vpop.f32.mrb[7].mxu0  ;;  %v559_v1 = vpop.f32.mrb[7].mxu1  ;;  %v618_v4 = vmul.f32 0.044715, %v1576_v51  ;;  %v634_v5 = vmul.f32 0.044715, %v1578_v52  ;;  %v1595_v6 = vadd.f32 %v517_v59, %v1548_v12  ;;  %v1603_v10 = vadd.f32 %v557_v60, %v399_v41 }
 0x115   : > { %v619_v9 = vmul.f32 0.044715, %v1582_v57  ;;  %v635_v17 = vmul.f32 0.044715, %v1584_v58  ;;  %v404_v22 = vpop.permute.xlu0 %403  ;;  %v1618_v23 = vadd.f32 %v519_v63, %v1548_v12  ;;  %v1620_v24 = vadd.f32 %v559_v1, %v399_v41 }
 0x116   : > { %v758_v26 = vmul.f32 0.7978846, %v726_v2  ;;  %v759_v27 = vmul.f32 0.7978846, %v727_v3  ;;  %v1623_v28 = vmul.f32 %v618_v4, %v1576_v51  ;;  %v1626_v29 = vmul.f32 %v634_v5, %v1578_v52 }
 0x117   : > { %v620_v32 = vmul.f32 0.044715, %v1595_v6  ;;  %v678_v35 = vmul.f32 %v646_v49, %v1558_v21  ;;  %v1631_v36 = vmul.f32 %v619_v9, %v1582_v57  ;;  %v636_v12 = vmul.f32 0.044715, %v1603_v10 }
 0x118   : > { %1294 = vtanh.f32 %v758_v26  ;;  %v621_v47 = vmul.f32 0.044715, %v1618_v23  ;;  %v637_v56 = vmul.f32 0.044715, %v1620_v24  ;;  %v679_v60 = vmul.f32 %v647_v55, %v1560_v25 }
 0x119   : > { %v523_v33 = vpop.f32.mrb[8].mxu0  ;;  %v563_v34 = vpop.f32.mrb[8].mxu1  ;;  %1296 = vtanh.f32 %v759_v27  ;;  %v710_v54 = vadd.f32 %v678_v35, %v1558_v21  ;;  %v1659_v63 = vmul.f32 %v635_v17, %v1584_v58  ;;  %v1662_v1 = vmul.f32 %v620_v32, %v1595_v6 }
 0x11a   : > { %v1635_v38 = vadd.f32 %v523_v33, %v1552_v15  ;;  %v525_v39 = vpop.f32.mrb[9].mxu0  ;;  %v565_v41 = vpop.f32.mrb[9].mxu1  ;;  %v1637_v42 = vadd.f32 %v563_v34, %v404_v22  ;;  %v1666_v3 = vmul.f32 0.5, %v1562_v30  ;;  %v1669_v21 = vmul.f32 %v636_v12, %v1603_v10 }
 0x11b   : > { %v1640_v43 = vadd.f32 %v525_v39, %v1552_v15  ;;  %v1642_v44 = vadd.f32 %v565_v41, %v404_v22  ;;  %v527_v45 = vpop.f32.mrb[10].mxu0  ;;  %v567_v46 = vpop.f32.mrb[10].mxu1  ;;  %v1675_v9 = vmul.f32 %v621_v47, %v1618_v23  ;;  %v742_v22 = vmul.f32 0.7978846, %v710_v54 }
 0x11c   : > { %v1646_v48 = vadd.f32 %v527_v45, %v1550_v14  ;;  %v1648_v49 = vadd.f32 %v567_v46, %v409_v20  ;;  %v529_v50 = vpop.f32.mrb[11].mxu0  ;;  %v569_v53 = vpop.f32.mrb[11].mxu1  ;;  %v622_v2 = vmul.f32 0.044715, %v1635_v38  ;;  %v1680_v26 = vmul.f32 %v637_v56, %v1620_v24 }
 0x11d   : > { %v1653_v15 = vadd.f32 %v529_v50, %v1550_v14  ;;  %v1655_v59 = vadd.f32 %v569_v53, %v409_v20  ;;  %v638_v14 = vmul.f32 0.044715, %v1637_v42  ;;  %v623_v4 = vmul.f32 0.044715, %v1640_v43  ;;  %v414_v5 = vpop.permute.xlu0 %413 }
 0x11e   : > { %1961 = vst [vmem:[#allocation2_spill] sm:$0xff] %v1648_v49  ;;  %v639_v55 = vmul.f32 0.044715, %v1642_v44  ;;  %v624_v17 = vmul.f32 0.044715, %v1646_v48  ;;  %v711_v35 = vadd.f32 %v679_v60, %v1560_v25  ;;  %1298 = vtanh.f32 %v742_v22 }
 0x11f   : > { %1962 = vst [vmem:[#allocation3_spill] sm:$0xff] %v1655_v59  ;;  %v640_v20 = vmul.f32 0.044715, %v1648_v49  ;;  %v625_v27 = vmul.f32 0.044715, %v1653_v15  ;;  %v680_v46 = vmul.f32 %v1587_v61, %v1562_v30  ;;  %v1693_v47 = vmul.f32 %v622_v2, %v1635_v38 }
 0x120   : > { %v641_v32 = vmul.f32 0.044715, %v1655_v59  ;;  %v1696_v50 = vmul.f32 %v638_v14, %v1637_v42  ;;  %v1707_v22 = vmul.f32 %v639_v55, %v1642_v44  ;;  %v1710_v61 = vmul.f32 %v624_v17, %v1646_v48  ;;  %v419_v55 = vpop.permute.xlu1 %418 }
 0x121   : > { %v533_v33 = vpop.f32.mrb[12].mxu0  ;;  %v573_v34 = vpop.f32.mrb[12].mxu1  ;;  %v1713_v2 = vmul.f32 %v640_v20, %v1648_v49 }
 0x122   : > { %v1686_v12 = vadd.f32 %v533_v33, %v1556_v16  ;;  %v1688_v39 = vadd.f32 %v573_v34, %v414_v5  ;;  %v535_v41 = vpop.f32.mrb[13].mxu0  ;;  %v575_v45 = vpop.f32.mrb[13].mxu1  ;;  %v1704_v33 = vmul.f32 %v623_v4, %v1640_v43  ;;  %1963 = vst [vmem:[#allocation4_spill] sm:$0xff] %v1707_v22  ;;  %1964 = vst [vmem:[#allocation5_spill] sm:$0xff] %v1710_v61 }
 0x123   : > { %v1699_v53 = vadd.f32 %v535_v41, %v1556_v16  ;;  %v1701_v25 = vadd.f32 %v575_v45, %v414_v5  ;;  %v537_v54 = vpop.f32.mrb[14].mxu0  ;;  %v577_v56 = vpop.f32.mrb[14].mxu1  ;;  %1965 = vst [vmem:[#allocation6_spill] sm:$0xff] %v1713_v2  ;;  %v743_v45 = vmul.f32 0.7978846, %v711_v35  ;;  %v681_v4 = vmul.f32 %v1600_v8, %v1567_v37 }
 0x124   : > { %v1295_v60 = vpop.eup %1294  ;;  %v539_v14 = vpop.f32.mrb[15].mxu0  ;;  %v626_v5 = vmul.f32 0.044715, %v1686_v12  ;;  %v642_v41 = vmul.f32 0.044715, %v1688_v39  ;;  %v1720_v22 = vmul.f32 %v625_v27, %v1653_v15  ;;  %v1723_v17 = vmul.f32 %v641_v32, %v1655_v59 }
 0x125   : > { %v579_v16 = vpop.f32.mrb[15].mxu1  ;;  %v1297_v34 = vpop.eup %1296  ;;  %v1726_v20 = vadd.f32 %v537_v54, %v1554_v0  ;;  %v712_v2 = vadd.f32 %v680_v46, %v1562_v30  ;;  %v627_v49 = vmul.f32 0.044715, %v1699_v53  ;;  %v643_v61 = vmul.f32 0.044715, %v1701_v25 }
 0x126   : > { %1966 = vst [vmem:[#allocation7_spill] sm:$0xff] %v1720_v22  ;;  %1967 = vst [vmem:[#allocation8_spill] sm:$0xff] %v1723_v17  ;;  %v1731_v35 = vadd.f32 %v577_v56, %v419_v55  ;;  %v1734_v8 = vmul.f32 0.5, %v1567_v37  ;;  %v1737_v27 = vadd.f32 %v539_v14, %v1554_v0  ;;  %v1739_v32 = vadd.f32 %v579_v16, %v419_v55 }
 0x127   : > { %v822_v54 = vadd.f32 1.0, %v1295_v60  ;;  %v823_v17 = vadd.f32 1.0, %v1297_v34  ;;  %v1743_v30 = vmul.f32 %v626_v5, %v1686_v12  ;;  %v1746_v46 = vmul.f32 %v642_v41, %v1688_v39 }
 0x128   : > { %1300 = vtanh.f32 %v743_v45  ;;  %v713_v56 = vadd.f32 %v681_v4, %v1567_v37  ;;  %v628_v59 = vmul.f32 0.044715, %v1726_v20  ;;  %v744_v14 = vmul.f32 0.7978846, %v712_v2  ;;  %v1299_v34 = vpop.eup %1298 }
 0x129   : > { %v854_v22 = vmul.f32 %v822_v54, %v1597_v7  ;;  %v855_v0 = vmul.f32 %v823_v17, %v1605_v11  ;;  %v1753_v16 = vmul.f32 0.044715, %v1731_v35  ;;  %v696_v37 = vmul.f32 %v1590_v62, %v1564_v31 }
 0x12a   : > { %v745_v60 = vmul.f32 0.7978846, %v713_v56  ;;  %v697_v7 = vmul.f32 %v1608_v13, %v1570_v40  ;;  %v1767_v11 = vmul.f32 %v627_v49, %v1699_v53  ;;  %1302 = vtanh.f32 %v744_v14 }
 0x12b   : > { %v1006_v2 = vadd.f32 %v855_v0, %v854_v22  ;;  %v1235_v5 = vpack.c.bf16 %v855_v0, %v854_v22  ;;  %v629_v41 = vmul.f32 0.044715, %v1737_v27  ;;  %v728_v45 = vadd.f32 %v696_v37, %v1564_v31 }
 0x12c   : > { %1304 = vtanh.f32 %v745_v60  ;;  %v729_v4 = vadd.f32 %v697_v7, %v1570_v40  ;;  %v1773_v55 = vmul.f32 %v643_v61, %v1701_v25  ;;  %v1776_v62 = vmul.f32 0.044715, %v1739_v32 }
 0x12d   : > { %1007 = vadd.xlane.f32.xlu1 %v1006_v2  ;;  %974 = vst [vmem:[%s1760_s30 + $0x40] sm:$0xff] %v1235_v5  ;;  %v698_v13 = vmul.f32 %v1626_v29, %v1578_v52  ;;  %v699_v49 = vmul.f32 %v1659_v63, %v1584_v58  ;;  %v1784_v22 = vmul.f32 %v628_v59, %v1726_v20  ;;  %v806_v17 = vadd.f32 1.0, %v1299_v34 }
 0x12e   : > { %v760_v54 = vmul.f32 0.7978846, %v728_v45  ;;  %v761_v56 = vmul.f32 0.7978846, %v729_v4  ;;  %v682_v14 = vmul.f32 %v1623_v28, %v1576_v51  ;;  %v683_v60 = vmul.f32 %v1631_v36, %v1582_v57 }
 0x12f   : > { %v730_v61 = vadd.f32 %v698_v13, %v1578_v52  ;;  %v731_v0 = vadd.f32 %v699_v49, %v1584_v58  ;;  %v1793_v29 = vmul.f32 %v629_v41, %v1737_v27  ;;  %v600_v63 = vmul.f32 0.5, %v1564_v31 }
 0x130   : > { %1306 = vtanh.f32 %v760_v54  ;;  %v684_v59 = vmul.f32 %v1662_v1, %v1595_v6  ;;  %v714_v34 = vadd.f32 %v682_v14, %v1576_v51  ;;  %v601_v28 = vmul.f32 0.5, %v1570_v40 }
 0x131   : > { %1308 = vtanh.f32 %v761_v56  ;;  %v762_v37 = vmul.f32 0.7978846, %v730_v61  ;;  %v763_v7 = vmul.f32 0.7978846, %v731_v0  ;;  %v715_v5 = vadd.f32 %v683_v60, %v1582_v57 }
 0x132   : > { %v1301_v2 = vpop.eup %1300  ;;  %v685_v36 = vmul.f32 %v1675_v9, %v1618_v23  ;;  %v716_v41 = vadd.f32 %v684_v59, %v1595_v6  ;;  %v838_v45 = vmul.f32 %v806_v17, %v1612_v18  ;;  %v746_v1 = vmul.f32 0.7978846, %v714_v34 }
 0x133   : > { %v807_v31 = vadd.f32 1.0, %v1301_v2  ;;  %1310 = vtanh.f32 %v762_v37  ;;  %v747_v4 = vmul.f32 0.7978846, %v715_v5  ;;  %v686_v56 = vmul.f32 %v1693_v47, %v1635_v38 }
 0x134   : > { %1312 = vtanh.f32 %v763_v7  ;;  %v717_v13 = vadd.f32 %v685_v36, %v1618_v23  ;;  %v748_v49 = vmul.f32 0.7978846, %v716_v41  ;;  %v1303_v54 = vpop.eup %1302  ;;  %v687_v9 = vmul.f32 %v1704_v33, %v1640_v43 }
 0x135   : > { %v839_v40 = vmul.f32 %v807_v31, %v1615_v19  ;;  %1314 = vtanh.f32 %v746_v1  ;;  %v808_v18 = vadd.f32 1.0, %v1303_v54  ;;  %v602_v17 = vmul.f32 0.5, %v1578_v52 }
 0x136   : > { %v1305_v61 = vpop.eup %1304  ;;  %1316 = vtanh.f32 %v747_v4  ;;  %v749_v0 = vmul.f32 0.7978846, %v717_v13  ;;  %v718_v37 = vadd.f32 %v686_v56, %v1635_v38  ;;  %v719_v47 = vadd.f32 %v687_v9, %v1640_v43 }
 0x137   : > { %v982_v14 = vadd.f32 %v839_v40, %v838_v45  ;;  %v1227_v60 = vpack.c.bf16 %v839_v40, %v838_v45  ;;  %v809_v59 = vadd.f32 1.0, %v1305_v61  ;;  %1318 = vtanh.f32 %v748_v49  ;;  %v1968_v49 = vld [vmem:[#allocation4_spill] sm:$0xff] }
 0x138   : > { %v840_v19 = vmul.f32 %v808_v18, %v1666_v3  ;;  %1320 = vtanh.f32 %v749_v0  ;;  %v603_v7 = vmul.f32 0.5, %v1584_v58  ;;  %v700_v52 = vmul.f32 %v1669_v21, %v1603_v10 }
 0x139   : > { %983 = vadd.xlane.f32.xlu0 %v982_v14  ;;  %966 = vst [vmem:[%s1760_s30] sm:$0xff] %v1227_v60  ;;  %v841_v33 = vmul.f32 %v809_v59, %v1734_v8  ;;  %v701_v34 = vmul.f32 %v1680_v26, %v1620_v24  ;;  %v586_v3 = vmul.f32 0.5, %v1576_v51  ;;  %v587_v5 = vmul.f32 0.5, %v1582_v57 }
 0x13a   : > { %v1307_v2 = vpop.eup %1306  ;;  %v750_v36 = vmul.f32 0.7978846, %v718_v37  ;;  %v751_v41 = vmul.f32 0.7978846, %v719_v47  ;;  %v732_v58 = vadd.f32 %v700_v52, %v1603_v10  ;;  %v702_v26 = vmul.f32 %v1696_v50, %v1637_v42 }
 0x13b   : > { %v1309_v31 = vpop.eup %1308  ;;  %v985_v45 = vadd.f32 %v841_v33, %v840_v19  ;;  %v1228_v1 = vpack.c.bf16 %v841_v33, %v840_v19  ;;  %v824_v8 = vadd.f32 1.0, %v1307_v2  ;;  %v733_v21 = vadd.f32 %v701_v34, %v1620_v24 }
 0x13c   : > { %v825_v4 = vadd.f32 1.0, %v1309_v31  ;;  %1322 = vtanh.f32 %v750_v36  ;;  %v764_v57 = vmul.f32 0.7978846, %v732_v58  ;;  %v703_v54 = vmul.f32 %v1968_v49, %v1642_v44 }
 0x13d   : > { %v1311_v13 = vpop.eup %1310  ;;  %986 = vadd.xlane.f32.xlu1 %v985_v45  ;;  %967 = vst [vmem:[%s1760_s30 + $0x8] sm:$0xff] %v1228_v1  ;;  %v856_v51 = vmul.f32 %v824_v8, %v600_v63  ;;  %1324 = vtanh.f32 %v751_v41  ;;  %v765_v61 = vmul.f32 0.7978846, %v733_v21  ;;  %v734_v18 = vadd.f32 %v702_v26, %v1637_v42  ;;  %v1970_v21 = vld [vmem:[#allocation7_spill] sm:$0xff] }
 0x13e   : > { %v1313_v40 = vpop.eup %1312  ;;  %v857_v56 = vmul.f32 %v825_v4, %v601_v28  ;;  %v826_v9 = vadd.f32 1.0, %v1311_v13  ;;  %v588_v50 = vmul.f32 0.5, %v1595_v6  ;;  %1326 = vtanh.f32 %v764_v57 }
 0x13f   : > { %v1315_v0 = vpop.eup %1314  ;;  %v827_v14 = vadd.f32 1.0, %v1313_v40  ;;  %v735_v60 = vadd.f32 %v703_v54, %v1642_v44  ;;  %1328 = vtanh.f32 %v765_v61  ;;  %v766_v34 = vmul.f32 0.7978846, %v734_v18 }
 0x140   : > { %v1317_v63 = vpop.eup %1316  ;;  %v1236_v59 = vpack.c.bf16 %v857_v56, %v856_v51  ;;  %v1009_v19 = vadd.f32 %v857_v56, %v856_v51  ;;  %v858_v37 = vmul.f32 %v826_v9, %v602_v17  ;;  %v810_v47 = vadd.f32 1.0, %v1315_v0 }
 0x141   : > { %v1319_v33 = vpop.eup %1318  ;;  %v859_v52 = vmul.f32 %v827_v14, %v603_v7  ;;  %v811_v28 = vadd.f32 1.0, %v1317_v63  ;;  %v589_v6 = vmul.f32 0.5, %v1618_v23  ;;  %v767_v31 = vmul.f32 0.7978846, %v735_v60  ;;  %v1969_v7 = vld [vmem:[#allocation5_spill] sm:$0xff] }
 0x142   : > { %v1321_v2 = vpop.eup %1320  ;;  %975 = vst [vmem:[%s1760_s30 + $0x48] sm:$0xff] %v1236_v59  ;;  %1010 = vadd.xlane.f32.xlu0 %v1009_v19  ;;  %v842_v36 = vmul.f32 %v810_v47, %v586_v3  ;;  %v812_v41 = vadd.f32 1.0, %v1319_v33  ;;  %1330 = vtanh.f32 %v766_v34  ;;  %v688_v4 = vmul.f32 %v1969_v7, %v1646_v48 }
 0x143   : > { %v1237_v45 = vpack.c.bf16 %v859_v52, %v858_v37  ;;  %v1012_v1 = vadd.f32 %v859_v52, %v858_v37  ;;  %v843_v8 = vmul.f32 %v811_v28, %v587_v5  ;;  %v813_v58 = vadd.f32 1.0, %v1321_v2  ;;  %v1972_v28 = vld [vmem:[#allocation6_spill] sm:$0xff]  ;;  %v1973_v2 = vld [vmem:[#allocation3_spill] sm:$0xff] }
 0x144   : > { %v844_v17 = vmul.f32 %v812_v41, %v588_v50  ;;  %v689_v26 = vmul.f32 %v1970_v21, %v1653_v15  ;;  %1332 = vtanh.f32 %v767_v31  ;;  %v590_v57 = vmul.f32 0.5, %v1635_v38 }
 0x145   : > { %976 = vst [vmem:[%s1760_s30 + $0x50] sm:$0xff] %v1237_v45  ;;  %1013 = vadd.xlane.f32.xlu1 %v1012_v1  ;;  %v1229_v3 = vpack.c.bf16 %v843_v8, %v842_v36  ;;  %v988_v13 = vadd.f32 %v843_v8, %v842_v36  ;;  %v845_v23 = vmul.f32 %v813_v58, %v589_v6  ;;  %v591_v5 = vmul.f32 0.5, %v1640_v43  ;;  %v1974_v36 = vld [vmem:[#allocation8_spill] sm:$0xff] }
 0x146   : > { %v1323_v51 = vpop.eup %1322  ;;  %v720_v49 = vadd.f32 %v688_v4, %v1646_v48  ;;  %v721_v54 = vadd.f32 %v689_v26, %v1653_v15  ;;  %v690_v18 = vmul.f32 %v1743_v30, %v1686_v12  ;;  %v691_v38 = vmul.f32 %v1767_v11, %v1699_v53  ;;  %v1971_v11 = vld [vmem:[#allocation2_spill] sm:$0xff] }
 0x147   : > { %v1325_v40 = vpop.eup %1324  ;;  %968 = vst [vmem:[%s1760_s30 + $0x10] sm:$0xff] %v1229_v3  ;;  %989 = vadd.xlane.f32.xlu0 %v988_v13  ;;  %v1230_v56 = vpack.c.bf16 %v845_v23, %v844_v17  ;;  %v991_v9 = vadd.f32 %v845_v23, %v844_v17  ;;  %v814_v61 = vadd.f32 1.0, %v1323_v51  ;;  %v604_v63 = vmul.f32 0.5, %v1603_v10 }
 0x148   : > { %v815_v0 = vadd.f32 1.0, %v1325_v40  ;;  %v752_v14 = vmul.f32 0.7978846, %v720_v49  ;;  %v753_v50 = vmul.f32 0.7978846, %v721_v54  ;;  %v1327_v43 = vpop.eup %1326  ;;  %v605_v59 = vmul.f32 0.5, %v1620_v24 }
 0x149   : > { %969 = vst [vmem:[%s1760_s30 + $0x18] sm:$0xff] %v1230_v56  ;;  %v846_v60 = vmul.f32 %v814_v61, %v590_v57  ;;  %v722_v19 = vadd.f32 %v690_v18, %v1686_v12  ;;  %v828_v47 = vadd.f32 1.0, %v1327_v43  ;;  %v723_v30 = vadd.f32 %v691_v38, %v1699_v53  ;;  %v1329_v33 = vpop.eup %1328 }
 0x14a   : > { %v847_v37 = vmul.f32 %v815_v0, %v591_v5  ;;  %1334 = vtanh.f32 %v752_v14  ;;  %v704_v34 = vmul.f32 %v1972_v28, %v1971_v11  ;;  %v705_v10 = vmul.f32 %v1974_v36, %v1973_v2 }
 0x14b   : > { %992 = vadd.xlane.f32.xlu0 %v991_v9  ;;  %1336 = vtanh.f32 %v753_v50  ;;  %v754_v52 = vmul.f32 0.7978846, %v722_v19  ;;  %v829_v41 = vadd.f32 1.0, %v1329_v33  ;;  %v860_v31 = vmul.f32 %v828_v47, %v604_v63 }
 0x14c   : > { %v1231_v6 = vpack.c.bf16 %v847_v37, %v846_v60  ;;  %v994_v24 = vadd.f32 %v847_v37, %v846_v60  ;;  %v755_v45 = vmul.f32 0.7978846, %v723_v30  ;;  %v736_v1 = vadd.f32 %v704_v34, %v1971_v11  ;;  %v1331_v58 = vpop.eup %1330 }
 0x14d   : > { %1338 = vtanh.f32 %v754_v52  ;;  %v737_v8 = vadd.f32 %v705_v10, %v1973_v2  ;;  %v861_v17 = vmul.f32 %v829_v41, %v605_v59  ;;  %v606_v7 = vmul.f32 0.5, %v1637_v42 }
 0x14e   : > { %970 = vst [vmem:[%s1760_s30 + $0x20] sm:$0xff] %v1231_v6  ;;  %995 = vadd.xlane.f32.xlu1 %v994_v24  ;;  %v607_v4 = vmul.f32 0.5, %v1642_v44  ;;  %v706_v21 = vmul.f32 %v1746_v46, %v1688_v39  ;;  %v1333_v26 = vpop.eup %1332  ;;  %v830_v3 = vadd.f32 1.0, %v1331_v58  ;;  %1340 = vtanh.f32 %v755_v45 }
 0x14f   : > { %v768_v13 = vmul.f32 0.7978846, %v736_v1  ;;  %v769_v23 = vmul.f32 0.7978846, %v737_v8  ;;  %v1238_v51 = vpack.c.bf16 %v861_v17, %v860_v31  ;;  %v1015_v57 = vadd.f32 %v861_v17, %v860_v31 }
 0x150   : > { %v831_v5 = vadd.f32 1.0, %v1333_v26  ;;  %v707_v49 = vmul.f32 %v1773_v55, %v1701_v25  ;;  %v676_v42 = vmul.f32 %v1753_v16, %v1731_v35  ;;  %v862_v54 = vmul.f32 %v830_v3, %v606_v7 }
 0x151   : > { %1342 = vtanh.f32 %v768_v13  ;;  %v738_v44 = vadd.f32 %v706_v21, %v1688_v39  ;;  %v677_v46 = vmul.f32 %v1776_v62, %v1739_v32  ;;  %977 = vst [vmem:[%s1760_s30 + $0x58] sm:$0xff] %v1238_v51  ;;  %1016 = vadd.xlane.f32.xlu0 %v1015_v57  ;;  %v592_v9 = vmul.f32 0.5, %v1646_v48 }
 0x152   : > { %v863_v40 = vmul.f32 %v831_v5, %v607_v4  ;;  %1344 = vtanh.f32 %v769_v23  ;;  %v739_v56 = vadd.f32 %v707_v49, %v1701_v25  ;;  %v692_v16 = vmul.f32 %v1784_v22, %v1726_v20 }
 0x153   : > { %v770_v55 = vmul.f32 0.7978846, %v738_v44  ;;  %v693_v61 = vmul.f32 %v1793_v29, %v1737_v27  ;;  %v593_v62 = vmul.f32 0.5, %v1653_v15  ;;  %v708_v22 = vmul.f32 %v676_v42, %v1731_v35 }
 0x154   : > { %v1335_v18 = vpop.eup %1334  ;;  %v1239_v0 = vpack.c.bf16 %v863_v40, %v862_v54  ;;  %v1018_v14 = vadd.f32 %v863_v40, %v862_v54  ;;  %v771_v50 = vmul.f32 0.7978846, %v739_v56  ;;  %v724_v60 = vadd.f32 %v692_v16, %v1726_v20 }
 0x155   : > { %v1337_v38 = vpop.eup %1336  ;;  %v816_v43 = vadd.f32 1.0, %v1335_v18  ;;  %1346 = vtanh.f32 %v770_v55  ;;  %v725_v48 = vadd.f32 %v693_v61, %v1737_v27  ;;  %v709_v29 = vmul.f32 %v677_v46, %v1739_v32 }
 0x156   : > { %978 = vst [vmem:[%s1760_s30 + $0x60] sm:$0xff] %v1239_v0  ;;  %1019 = vadd.xlane.f32.xlu1 %v1018_v14  ;;  %v817_v63 = vadd.f32 1.0, %v1337_v38  ;;  %1348 = vtanh.f32 %v771_v50  ;;  %v594_v15 = vmul.f32 0.5, %v1686_v12  ;;  %v756_v37 = vmul.f32 0.7978846, %v724_v60 }
 0x157   : > { %v1339_v59 = vpop.eup %1338  ;;  %v848_v19 = vmul.f32 %v816_v43, %v592_v9  ;;  %v757_v47 = vmul.f32 0.7978846, %v725_v48  ;;  %v740_v52 = vadd.f32 %v708_v22, %v1731_v35  ;;  %v741_v28 = vadd.f32 %v709_v29, %v1739_v32 }
 0x158   : > { %v849_v30 = vmul.f32 %v817_v63, %v593_v62  ;;  %v818_v33 = vadd.f32 1.0, %v1339_v59  ;;  %v1341_v34 = vpop.eup %1340  ;;  %v595_v36 = vmul.f32 0.5, %v1699_v53  ;;  %1350 = vtanh.f32 %v756_v37 }
 0x159   : > { %v819_v24 = vadd.f32 1.0, %v1341_v34  ;;  %1352 = vtanh.f32 %v757_v47  ;;  %v772_v12 = vmul.f32 0.7978846, %v740_v52  ;;  %v773_v45 = vmul.f32 0.7978846, %v741_v28 }
 0x15a   : > { %v1232_v10 = vpack.c.bf16 %v849_v30, %v848_v19  ;;  %v997_v6 = vadd.f32 %v849_v30, %v848_v19  ;;  %v850_v41 = vmul.f32 %v818_v33, %v594_v15  ;;  %v608_v58 = vmul.f32 0.5, %v1971_v11 }
 0x15b   : > { %v1343_v31 = vpop.eup %1342  ;;  %v851_v8 = vmul.f32 %v819_v24, %v595_v36  ;;  %v609_v7 = vmul.f32 0.5, %v1973_v2  ;;  %1354 = vtanh.f32 %v772_v12  ;;  %v610_v51 = vmul.f32 0.5, %v1688_v39 }
 0x15c   : > { %v1345_v1 = vpop.eup %1344  ;;  %971 = vst [vmem:[%s1760_s30 + $0x28] sm:$0xff] %v1232_v10  ;;  %998 = vadd.xlane.f32.xlu0 %v997_v6  ;;  %v832_v17 = vadd.f32 1.0, %v1343_v31  ;;  %1356 = vtanh.f32 %v773_v45  ;;  %v611_v49 = vmul.f32 0.5, %v1701_v25  ;;  %v596_v46 = vmul.f32 0.5, %v1726_v20 }
 0x15d   : > { %v833_v53 = vadd.f32 1.0, %v1345_v1  ;;  %v1233_v4 = vpack.c.bf16 %v851_v8, %v850_v41  ;;  %v1000_v21 = vadd.f32 %v851_v8, %v850_v41  ;;  %v597_v39 = vmul.f32 0.5, %v1737_v27 }
 0x15e   : > { %v864_v26 = vmul.f32 %v832_v17, %v608_v58  ;;  %v612_v14 = vmul.f32 0.5, %v1731_v35  ;;  %v613_v20 = vmul.f32 0.5, %v1739_v32 }
 0x15f   : > { %v1347_v3 = vpop.eup %1346  ;;  %v865_v13 = vmul.f32 %v833_v53, %v609_v7  ;;  %972 = vst [vmem:[%s1760_s30 + $0x30] sm:$0xff] %v1233_v4  ;;  %1001 = vadd.xlane.f32.xlu1 %v1000_v21 }
 0x160   : > { %v1349_v23 = vpop.eup %1348  ;;  %v834_v57 = vadd.f32 1.0, %v1347_v3 }
 0x161   : > { %v1240_v5 = vpack.c.bf16 %v865_v13, %v864_v26  ;;  %v1021_v11 = vadd.f32 %v865_v13, %v864_v26  ;;  %v835_v2 = vadd.f32 1.0, %v1349_v23 }
 0x162   : > { %v866_v42 = vmul.f32 %v834_v57, %v610_v51  ;;  %v1351_v54 = vpop.eup %1350 }
 0x163   : > { %979 = vst [vmem:[%s1760_s30 + $0x68] sm:$0xff] %v1240_v5  ;;  %1022 = vadd.xlane.f32.xlu0 %v1021_v11  ;;  %v867_v44 = vmul.f32 %v835_v2, %v611_v49  ;;  %v820_v40 = vadd.f32 1.0, %v1351_v54  ;;  %v1353_v56 = vpop.eup %1352 }
 0x164   : > { %v821_v16 = vadd.f32 1.0, %v1353_v56 }
 0x165   : > { %v1241_v9 = vpack.c.bf16 %v867_v44, %v866_v42  ;;  %v1024_v55 = vadd.f32 %v867_v44, %v866_v42  ;;  %v852_v61 = vmul.f32 %v820_v40, %v596_v46  ;;  %v1355_v18 = vpop.eup %1354 }
 0x166   : > { %v1357_v25 = vpop.eup %1356  ;;  %v853_v0 = vmul.f32 %v821_v16, %v597_v39  ;;  %v836_v62 = vadd.f32 1.0, %v1355_v18 }
 0x167   : > { %980 = vst [vmem:[%s1760_s30 + $0x70] sm:$0xff] %v1241_v9  ;;  %1025 = vadd.xlane.f32.xlu1 %v1024_v55  ;;  %v837_v50 = vadd.f32 1.0, %v1357_v25 }
 0x168   : > { %v1234_v38 = vpack.c.bf16 %v853_v0, %v852_v61  ;;  %v1003_v43 = vadd.f32 %v853_v0, %v852_v61  ;;  %v868_v60 = vmul.f32 %v836_v62, %v612_v14 }
 0x169   : > { %v869_v27 = vmul.f32 %v837_v50, %v613_v20 }
 0x16a   : > { %973 = vst [vmem:[%s1760_s30 + $0x38] sm:$0xff] %v1234_v38  ;;  %1004 = vadd.xlane.f32.xlu0 %v1003_v43 }
 0x16b   : > { %v1242_v48 = vpack.c.bf16 %v869_v27, %v868_v60  ;;  %v1027_v63 = vadd.f32 %v869_v27, %v868_v60 }
 0x16d   : > { %981 = vst [vmem:[%s1760_s30 + $0x78] sm:$0xff] %v1242_v48 }
 0x16e   : > { %1028 = vadd.xlane.f32.xlu0 %v1027_v63 }
 0x1ba   : > { %v1008_v35 = vpop.xlane.xlu1 %1007 }
 0x1bb   : > { %1039 = vst.msk [vmem:[%s1909_s7 + $0x40] sm:$0xff] %vm1030_vm0, %v1008_v35 }
 0x1c6   : > { %v984_v32 = vpop.xlane.xlu0 %983 }
 0x1c7   : > { %1031 = vst.msk [vmem:[%s1909_s7] sm:$0xff] %vm1030_vm0, %v984_v32 }
 0x1ca   : > { %v987_v22 = vpop.xlane.xlu1 %986 }
 0x1cb   : > { %1032 = vst.msk [vmem:[%s1909_s7 + $0x8] sm:$0xff] %vm1030_vm0, %v987_v22 }
 0x1cf   : > { %v1011_v29 = vpop.xlane.xlu0 %1010 }
 0x1d0   : > { %1040 = vst.msk [vmem:[%s1909_s7 + $0x48] sm:$0xff] %vm1030_vm0, %v1011_v29 }
 0x1d2   : > { %v1014_v59 = vpop.xlane.xlu1 %1013 }
 0x1d3   : > { %1041 = vst.msk [vmem:[%s1909_s7 + $0x50] sm:$0xff] %vm1030_vm0, %v1014_v59 }
 0x1d4   : > { %v990_v19 = vpop.xlane.xlu0 %989 }
 0x1d5   : > { %1033 = vst.msk [vmem:[%s1909_s7 + $0x10] sm:$0xff] %vm1030_vm0, %v990_v19 }
 0x1d8   : > { %v993_v15 = vpop.xlane.xlu0 %992 }
 0x1d9   : > { %1034 = vst.msk [vmem:[%s1909_s7 + $0x18] sm:$0xff] %vm1030_vm0, %v993_v15 }
 0x1db   : > { %v996_v37 = vpop.xlane.xlu1 %995 }
 0x1dc   : > { %1035 = vst.msk [vmem:[%s1909_s7 + $0x20] sm:$0xff] %vm1030_vm0, %v996_v37 }
 0x1de   : > { %v1017_v47 = vpop.xlane.xlu0 %1016 }
 0x1df   : > { %1042 = vst.msk [vmem:[%s1909_s7 + $0x58] sm:$0xff] %vm1030_vm0, %v1017_v47 }
 0x1e3   : > { %v1020_v30 = vpop.xlane.xlu1 %1019 }
 0x1e4   : > { %1043 = vst.msk [vmem:[%s1909_s7 + $0x60] sm:$0xff] %vm1030_vm0, %v1020_v30 }
 0x1e9   : > { %v999_v33 = vpop.xlane.xlu0 %998 }
 0x1ea   : > { %1036 = vst.msk [vmem:[%s1909_s7 + $0x28] sm:$0xff] %vm1030_vm0, %v999_v33 }
 0x1ec   : > { %v1002_v52 = vpop.xlane.xlu1 %1001 }
 0x1ed   : > { %1037 = vst.msk [vmem:[%s1909_s7 + $0x30] sm:$0xff] %vm1030_vm0, %v1002_v52 }
 0x1f0   : > { %v1023_v28 = vpop.xlane.xlu0 %1022 }
 0x1f1   : > { %1044 = vst.msk [vmem:[%s1909_s7 + $0x68] sm:$0xff] %vm1030_vm0, %v1023_v28 }
 0x1f4   : > { %v1026_v34 = vpop.xlane.xlu1 %1025 }
 0x1f5   : > { %1045 = vst.msk [vmem:[%s1909_s7 + $0x70] sm:$0xff] %vm1030_vm0, %v1026_v34 }
 0x1f7   : > { %v1005_v36 = vpop.xlane.xlu0 %1004 }
 0x1f8   : > { %1038 = vst.msk [vmem:[%s1909_s7 + $0x38] sm:$0xff] %vm1030_vm0, %v1005_v36 }
 0x1fb   : > { %v1029_v10 = vpop.xlane.xlu0 %1028 }
 0x1fc   : > { %1046 = vst.msk [vmem:[%s1909_s7 + $0x78] sm:$0xff] %vm1030_vm0, %v1029_v10 }
 0x1fd PF: > { %s15_s17 = sadd.s32 1, %s1380_s17   ;;  %s1975_s15 = smov %s1376_s16 }
 0x1fe   : > { %p12_p5 = scmp.ge.s32.totalorder %s15_s17, 4   ;;  %s1976_s16 = smov %s1978_s18 }
 0x200   :  { %14 = sbr.rel (!%p12_p5) target bundleno = 2 (0x2), region = 74 }

// kernel: se_attention_fwd.5
= control target key start
LH: loop header
LB: loop body
LE: loop exit
PB: predicated region body
PF: predicated region fallthrough
CT: control target
= control target key end

     0   :  { %s1463_s15 = smov 0   ;;  %s1465_s16 = smov 0   ;;  %s1957_s0 = inlined_call_operand.vmem [shape: bf16[2,128,256], index: 0, kind: input, shape index: {}]   ;;  %s1958_s1 = inlined_call_operand.vmem [shape: f32[2,128,1], index: 1, kind: input, shape index: {}]   ;;  %s1959_s2 = inlined_call_operand.vmem [shape: bf16[128,128], index: 2, kind: input, shape index: {}]   ;;  %s1960_s3 = inlined_call_operand.vmem [shape: f32[128,1], index: 3, kind: input, shape index: {}]   ;;  %s1961_s4 = inlined_call_operand.vmem [shape: f32[2,128,256], index: 4, kind: output, shape index: {}]  }
   0x1   :  { %s1467_s17 = smov 0  }
   0x2 LB: > { %s26_s18 = sadd.s32 1, %s1429_s16  ;;  %p1258_p0 = scmp.ge.s32.totalorder %s1433_s17, 1  ;;  %s1433_s17 = sphi %s1467_s17, %s14_s17   ;;  %s1429_s16 = sphi %s1465_s16, %s1963_s16   ;;  %s1425_s15 = sphi %s1463_s15, %s1962_s15  }
   0x3   : > { %p28_p1 = scmp.ge.s32.totalorder %s26_s18, 2  ;;  %p193_p2 = scmp.lt.s32.totalorder %s1433_s17, 3 }
   0x5   : > { %s1965_s18 = smov (%p28_p1, %s26_s18), 0  ;;  %p194_p3 = pnand %p1258_p0, %p193_p2 }
   0x6   : > { %p233_p4 = scmp.lt.s32.totalorder (!%p194_p3), %s1425_s15, 1  ;;  %v1435_v0 = vmov (!%p194_p3), 0   ;;  %v499_v25 = vld [vmem:[%s1960_s3 + $0x8] sm:$0xff] (!%p194_p3)  ;;  %v498_v26 = vld [vmem:[%s1960_s3] sm:$0xff] (!%p194_p3)  ;;  %v501_v27 = vld [vmem:[%s1960_s3 + $0x18] sm:$0xff] (!%p194_p3)  ;;  %v341_v43 = vlaneseq (!%p194_p3) }
   0x7   : > { %197 = sbr.rel (%p194_p3) target bundleno = 497 (0x1f1), region = 36  ;;  %1338 = vset.pattern.permute.xlu1 (!%p194_p3), %v1435_v0  ;;  %1337 = vset.pattern.permute.xlu0 (!%p194_p3), %v1435_v0  ;;  %v500_v28 = vld [vmem:[%s1960_s3 + $0x10] sm:$0xff] (!%p194_p3)  ;;  %v503_v29 = vld [vmem:[%s1960_s3 + $0x28] sm:$0xff] (!%p194_p3)  ;;  %v502_v30 = vld [vmem:[%s1960_s3 + $0x20] sm:$0xff] (!%p194_p3)  ;;  %v1436_v41 = vmov (!%p194_p3), 839922192  }
   0x8   : > { %754 = vmatprep.mubr.bf16.mxu0 (!%p194_p3), %v1435_v0  ;;  %794 = vmatprep.mubr.bf16.mxu1 (!%p194_p3), %v1435_v0  ;;  %v505_v31 = vld [vmem:[%s1960_s3 + $0x38] sm:$0xff] (!%p194_p3)  ;;  %v504_v32 = vld [vmem:[%s1960_s3 + $0x30] sm:$0xff] (!%p194_p3)  ;;  %v507_v33 = vld [vmem:[%s1960_s3 + $0x48] sm:$0xff] (!%p194_p3)  ;;  %v339_v42 = vunpack.c.l.s4 (!%p194_p3), %v1436_v41  ;;  %v1437_v44 = vmov (!%p194_p3), 1985246804   ;;  %v342_v47 = vshrl.u32 (!%p194_p3), %v341_v43, 7 }
   0x9   : > { %v506_v34 = vld [vmem:[%s1960_s3 + $0x40] sm:$0xff] (!%p194_p3)  ;;  %v509_v35 = vld [vmem:[%s1960_s3 + $0x58] sm:$0xff] (!%p194_p3)  ;;  %v508_v36 = vld [vmem:[%s1960_s3 + $0x50] sm:$0xff] (!%p194_p3)  ;;  %v346_v45 = vunpack.c.l.s4 (!%p194_p3), %v1437_v44 }
   0xa   : > { %v511_v37 = vld [vmem:[%s1960_s3 + $0x68] sm:$0xff] (!%p194_p3)  ;;  %v510_v38 = vld [vmem:[%s1960_s3 + $0x60] sm:$0xff] (!%p194_p3)  ;;  %v513_v39 = vld [vmem:[%s1960_s3 + $0x78] sm:$0xff] (!%p194_p3)  ;;  %v340_v46 = vunpack.c.0.s8 (!%p194_p3), %v339_v42 }
   0xb   : > { %v512_v40 = vld [vmem:[%s1960_s3 + $0x70] sm:$0xff] (!%p194_p3)  ;;  %v347_v48 = vunpack.c.0.s8 (!%p194_p3), %v346_v45 }
   0xc   : > { %v1548_v49 = vsub.s32 (!%p194_p3), %v340_v46, %v342_v47 }
   0xd   : > { %v1550_v50 = vsub.s32 (!%p194_p3), %v347_v48, %v342_v47 }
   0xe   : > { %s1967_s15 = smov (!%p233_p4, %s1425_s15), 1 }
   0xf   : > { %s1291_s19 = sshll.u32 %s1967_s15, 7  ;;  %s1293_s5 = sshll.u32 %s1967_s15, 8 }
  0x10   : > { %s246_s22 = scalar_lea.vmem %s1958_s1, %s1291_s19  ;;  %s1546_s10 = scalar_lea.vmem %s1957_s0, %s1291_s19 }
  0x11   : > { %v278_v1 = vld [vmem:[%s246_s22 + $0x20] sm:$0xff]  ;;  %v279_v2 = vld [vmem:[%s246_s22 + $0x28] sm:$0xff]  ;;  %v280_v6 = vld [vmem:[%s246_s22 + $0x30] sm:$0xff]  ;;  %s1733_s7 = scalar_lea.vmem %s1961_s4, %s1293_s5 }
  0x12   : > { %v274_v3 = vld [vmem:[%s246_s22] sm:$0xff]  ;;  %v292_v4 = vpack.c.bf16 %v279_v2, %v278_v1  ;;  %v275_v5 = vld [vmem:[%s246_s22 + $0x8] sm:$0xff]  ;;  %v281_v7 = vld [vmem:[%s246_s22 + $0x38] sm:$0xff] }
  0x13   : > { %v290_v8 = vpack.c.bf16 %v275_v5, %v274_v3  ;;  %v276_v9 = vld [vmem:[%s246_s22 + $0x10] sm:$0xff]  ;;  %v277_v10 = vld [vmem:[%s246_s22 + $0x18] sm:$0xff]  ;;  %v293_v11 = vpack.c.bf16 %v281_v7, %v280_v6  ;;  %v282_v15 = vld [vmem:[%s246_s22 + $0x40] sm:$0xff] }
  0x14   : > { %308 = vperm.xlu1 %1338, %v292_v4   ;;  %v291_v12 = vpack.c.bf16 %v277_v10, %v276_v9  ;;  %v284_v13 = vld [vmem:[%s246_s22 + $0x50] sm:$0xff]  ;;  %v285_v14 = vld [vmem:[%s246_s22 + $0x58] sm:$0xff]  ;;  %v283_v16 = vld [vmem:[%s246_s22 + $0x48] sm:$0xff] }
  0x15   : > { %300 = vperm.xlu0 %1337, %v290_v8   ;;  %v288_v17 = vld [vmem:[%s246_s22 + $0x70] sm:$0xff]  ;;  %v295_v18 = vpack.c.bf16 %v285_v14, %v284_v13  ;;  %v289_v19 = vld [vmem:[%s246_s22 + $0x78] sm:$0xff]  ;;  %v294_v20 = vpack.c.bf16 %v283_v16, %v282_v15  ;;  %v286_v21 = vld [vmem:[%s246_s22 + $0x60] sm:$0xff] }
  0x16   : > { %v287_v22 = vld [vmem:[%s246_s22 + $0x68] sm:$0xff]  ;;  %v297_v23 = vpack.c.bf16 %v289_v19, %v288_v17  ;;  %v258_v55 = vld [vmem:[%s1546_s10] sm:$0xff]  ;;  %v260_v3 = vld [vmem:[%s1546_s10 + $0x10] sm:$0xff] }
  0x17   : > { %v296_v24 = vpack.c.bf16 %v287_v22, %v286_v21  ;;  %v259_v56 = vld [vmem:[%s1546_s10 + $0x8] sm:$0xff]  ;;  %v262_v57 = vld [vmem:[%s1546_s10 + $0x20] sm:$0xff]  ;;  %v261_v4 = vld [vmem:[%s1546_s10 + $0x18] sm:$0xff] }
  0x18   : > { %312 = vperm.xlu1 %1338, %v293_v11   ;;  %v263_v58 = vld [vmem:[%s1546_s10 + $0x28] sm:$0xff]  ;;  %v264_v11 = vld [vmem:[%s1546_s10 + $0x30] sm:$0xff]  ;;  %v265_v15 = vld [vmem:[%s1546_s10 + $0x38] sm:$0xff] }
  0x19   : > { %304 = vperm.xlu0 %1337, %v291_v12   ;;  %v270_v43 = vld [vmem:[%s1546_s10 + $0x60] sm:$0xff]  ;;  %v271_v44 = vld [vmem:[%s1546_s10 + $0x68] sm:$0xff] }
  0x1c   : > { %320 = vperm.xlu1 %1338, %v295_v18  }
  0x1d   : > { %316 = vperm.xlu0 %1337, %v294_v20  }
  0x20   : > { %328 = vperm.xlu1 %1338, %v297_v23  }
  0x21   : > { %324 = vperm.xlu0 %1337, %v296_v24  }
  0x24   : > { %521 = vperm.xlu1 %1338, %v499_v25   ;;  %v266_v25 = vld [vmem:[%s1546_s10 + $0x40] sm:$0xff] }
  0x25   : > { %516 = vperm.xlu0 %1337, %v498_v26   ;;  %v267_v26 = vld [vmem:[%s1546_s10 + $0x48] sm:$0xff] }
  0x28   : > { %531 = vperm.xlu1 %1338, %v501_v27  }
  0x29   : > { %526 = vperm.xlu0 %1337, %v500_v28  }
  0x2c   : > { %541 = vperm.xlu1 %1338, %v503_v29   ;;  %v268_v29 = vld [vmem:[%s1546_s10 + $0x50] sm:$0xff] }
  0x2d   : > { %536 = vperm.xlu0 %1337, %v502_v30  }
  0x30   : > { %551 = vperm.xlu1 %1338, %v505_v31  }
  0x31   : > { %546 = vperm.xlu0 %1337, %v504_v32  }
  0x34   : > { %561 = vperm.xlu1 %1338, %v507_v33  }
  0x35   : > { %556 = vperm.xlu0 %1337, %v506_v34   ;;  %v269_v34 = vld [vmem:[%s1546_s10 + $0x58] sm:$0xff] }
  0x38   : > { %571 = vperm.xlu1 %1338, %v509_v35  }
  0x39   : > { %566 = vperm.xlu0 %1337, %v508_v36  }
  0x3c   : > { %581 = vperm.xlu1 %1338, %v511_v37  }
  0x3d   : > { %576 = vperm.xlu0 %1337, %v510_v38  }
  0x40   : > { %591 = vperm.xlu1 %1338, %v513_v39  }
  0x41   : > { %586 = vperm.xlu0 %1337, %v512_v40  }
  0x93   : > { %v309_v51 = vpop.permute.xlu1 %308 }
  0x94   : > { %v372_v52 = vrot.slane %v309_v51, %v1548_v49  ;;  %v379_v53 = vrot.slane %v309_v51, %v1550_v50  ;;  %v301_v54 = vpop.permute.xlu0 %300 }
  0x95   : > { %v344_v59 = vrot.slane %v301_v54, %v1548_v49  ;;  %v351_v60 = vrot.slane %v301_v54, %v1550_v50  ;;  %v273_v54 = vld [vmem:[%s1546_s10 + $0x78] sm:$0xff] }
  0x96   : > { %v470_v63 = vmul.bf16 %v372_v52, %v262_v57  ;;  %v471_v1 = vmul.bf16 %v379_v53, %v263_v58  ;;  %v272_v53 = vld [vmem:[%s1546_s10 + $0x70] sm:$0xff] }
  0x97   : > { %v466_v61 = vmul.bf16 %v344_v59, %v258_v55  ;;  %v467_v62 = vmul.bf16 %v351_v60, %v259_v56  ;;  %v313_v5 = vpop.permute.xlu1 %312  ;;  %v1339_v60 = vld [vmem:[%s1959_s2] sm:$0xff]  }
  0x98   : > { %v305_v2 = vpop.permute.xlu0 %304  ;;  %v386_v10 = vrot.slane %v313_v5, %v1548_v49  ;;  %v393_v12 = vrot.slane %v313_v5, %v1550_v50  ;;  %v1278_v19 = vcombine.high %v470_v63, %v471_v1  ;;  %v1277_v27 = vcombine.low %v470_v63, %v471_v1  ;;  %v1342_v63 = vld [vmem:[%s1959_s2 + $0x28] sm:$0xff]   ;;  %v1343_v1 = vld [vmem:[%s1959_s2 + $0x10] sm:$0xff]  }
  0x99   : > { %v358_v6 = vrot.slane %v305_v2, %v1548_v49  ;;  %v365_v7 = vrot.slane %v305_v2, %v1550_v50  ;;  %v1274_v8 = vcombine.high %v466_v61, %v467_v62  ;;  %v1273_v9 = vcombine.low %v466_v61, %v467_v62  ;;  %v1340_v61 = vld [vmem:[%s1959_s2 + $0x20] sm:$0xff]   ;;  %v1341_v62 = vld [vmem:[%s1959_s2 + $0x8] sm:$0xff]   ;;  %v1344_v2 = vld [vmem:[%s1959_s2 + $0x30] sm:$0xff]  }
  0x9a   : > { %v472_v20 = vmul.bf16 %v386_v10, %v264_v11  ;;  %v473_v21 = vmul.bf16 %v393_v12, %v265_v15 }
  0x9b   : > { %v468_v13 = vmul.bf16 %v358_v6, %v260_v3  ;;  %v469_v14 = vmul.bf16 %v365_v7, %v261_v4  ;;  %722 = vmatprep.subr.bf16.mxu0 %v1274_v8  ;;  %1294 = vmatprep.subr.bf16.mxu1 %v1274_v8  ;;  %v321_v22 = vpop.permute.xlu1 %320  ;;  %v1345_v3 = vld [vmem:[%s1959_s2 + $0x18] sm:$0xff]  }
  0x9c   : > { %v317_v16 = vpop.permute.xlu0 %316  ;;  %723 = vmatpush1.bf16.msra.mxu0 %v1273_v9  ;;  %1302 = vmatpush1.bf16.msra.mxu1 %v1273_v9  ;;  %v414_v28 = vrot.slane %v321_v22, %v1548_v49  ;;  %v421_v30 = vrot.slane %v321_v22, %v1550_v50  ;;  %v1280_v33 = vcombine.high %v472_v20, %v473_v21  ;;  %v1346_v4 = vld [vmem:[%s1959_s2 + $0x38] sm:$0xff]  }
  0x9d   : > { %v1276_v17 = vcombine.high %v468_v13, %v469_v14  ;;  %v1275_v18 = vcombine.low %v468_v13, %v469_v14  ;;  %v400_v23 = vrot.slane %v317_v16, %v1548_v49  ;;  %v407_v24 = vrot.slane %v317_v16, %v1550_v50 }
  0x9e   : > { %v476_v36 = vmul.bf16 %v414_v28, %v268_v29  ;;  %v1279_v37 = vcombine.low %v472_v20, %v473_v21  ;;  %v477_v38 = vmul.bf16 %v421_v30, %v269_v34 }
  0x9f   : > { %724 = vmatprep.subr.bf16.mxu0 %v1276_v17  ;;  %1295 = vmatprep.subr.bf16.mxu1 %v1276_v17  ;;  %v474_v31 = vmul.bf16 %v400_v23, %v266_v25  ;;  %v475_v32 = vmul.bf16 %v407_v24, %v267_v26  ;;  %v329_v39 = vpop.permute.xlu1 %328 }
  0xa0   : > { %725 = vmatpush1.bf16.msra.mxu0 %v1275_v18  ;;  %1303 = vmatpush1.bf16.msra.mxu1 %v1275_v18  ;;  %v325_v35 = vpop.permute.xlu0 %324  ;;  %v442_v45 = vrot.slane %v329_v39, %v1548_v49  ;;  %v449_v47 = vrot.slane %v329_v39, %v1550_v50  ;;  %v1284_v52 = vcombine.high %v476_v36, %v477_v38 }
  0xa1   : > { %726 = vmatprep.subr.bf16.mxu0 %v1278_v19  ;;  %1296 = vmatprep.subr.bf16.mxu1 %v1278_v19  ;;  %v428_v40 = vrot.slane %v325_v35, %v1548_v49  ;;  %v435_v41 = vrot.slane %v325_v35, %v1550_v50  ;;  %v1282_v42 = vcombine.high %v474_v31, %v475_v32 }
  0xa2   : > { %v1281_v46 = vcombine.low %v474_v31, %v475_v32  ;;  %v1283_v55 = vcombine.low %v476_v36, %v477_v38  ;;  %v480_v56 = vmul.bf16 %v442_v45, %v272_v53  ;;  %v481_v57 = vmul.bf16 %v449_v47, %v273_v54 }
  0xa3   : > { %v478_v48 = vmul.bf16 %v428_v40, %v270_v43  ;;  %v479_v51 = vmul.bf16 %v435_v41, %v271_v44  ;;  %v522_v6 = vpop.permute.xlu1 %521 }
  0xa4   : > { %727 = vmatpush1.bf16.msra.mxu0 %v1277_v27  ;;  %1304 = vmatpush1.bf16.msra.mxu1 %v1277_v27  ;;  %v1288_v59 = vcombine.high %v480_v56, %v481_v57  ;;  %v1287_v50 = vcombine.low %v480_v56, %v481_v57  ;;  %v517_v5 = vpop.permute.xlu0 %516 }
  0xa5   : > { %728 = vmatprep.subr.bf16.mxu0 %v1280_v33  ;;  %1297 = vmatprep.subr.bf16.mxu1 %v1280_v33  ;;  %v1286_v58 = vcombine.high %v478_v48, %v479_v51  ;;  %v1285_v49 = vcombine.low %v478_v48, %v479_v51 }
  0xa7   : > { %v1616_v8 = vpop.permute.xlu1 %531 }
  0xa8   : > { %729 = vmatpush1.bf16.msra.mxu0 %v1279_v37  ;;  %1305 = vmatpush1.bf16.msra.mxu1 %v1279_v37  ;;  %v1614_v7 = vpop.permute.xlu0 %526 }
  0xa9   : > { %730 = vmatprep.subr.bf16.mxu0 %v1282_v42  ;;  %1298 = vmatprep.subr.bf16.mxu1 %v1282_v42 }
  0xab   : > { %v1620_v10 = vpop.permute.xlu1 %541 }
  0xac   : > { %731 = vmatpush1.bf16.msra.mxu0 %v1281_v46  ;;  %1306 = vmatpush1.bf16.msra.mxu1 %v1281_v46  ;;  %v1618_v9 = vpop.permute.xlu0 %536 }
  0xad   : > { %732 = vmatprep.subr.bf16.mxu0 %v1284_v52  ;;  %1299 = vmatprep.subr.bf16.mxu1 %v1284_v52 }
  0xaf   : > { %v1624_v11 = vpop.permute.xlu1 %551 }
  0xb0   : > { %733 = vmatpush1.bf16.msra.mxu0 %v1283_v55  ;;  %1307 = vmatpush1.bf16.msra.mxu1 %v1283_v55 }
  0xb1   : > { %734 = vmatprep.subr.bf16.mxu0 %v1286_v58  ;;  %1300 = vmatprep.subr.bf16.mxu1 %v1286_v58 }
  0xb3   : > { %v562_v25 = vpop.permute.xlu1 %561 }
  0xb4   : > { %735 = vmatpush1.bf16.msra.mxu0 %v1285_v49  ;;  %1308 = vmatpush1.bf16.msra.mxu1 %v1285_v49 }
  0xb5   : > { %736 = vmatprep.subr.bf16.mxu0 %v1288_v59  ;;  %1301 = vmatprep.subr.bf16.mxu1 %v1288_v59 }
  0xb8   : > { %737 = vmatpush1.bf16.msra.mxu0 %v1287_v50  ;;  %1309 = vmatpush1.bf16.msra.mxu1 %v1287_v50 }
  0xbb   : > { %755 = vmatmul.mubr.bf16.vlgmr.msra.gmra.mrb[0].mxu0 %v1339_v60  ;;  %795 = vmatmul.mubr.bf16.vlgmr.msra.gmra.mrb[0].mxu1 %v1340_v61 }
  0xbc   : > { %764 = vmatprep.mubr.bf16.mxu0 %v1435_v0  ;;  %804 = vmatprep.mubr.bf16.mxu1 %v1435_v0 }
  0xc3   : > { %765 = vmatmul.mubr.bf16.gmra.mrb[4].mxu0 %v1341_v62  ;;  %805 = vmatmul.mubr.bf16.gmra.mrb[4].mxu1 %v1342_v63 }
  0xc4   : > { %774 = vmatprep.mubr.bf16.mxu0 %v1435_v0  ;;  %814 = vmatprep.mubr.bf16.mxu1 %v1435_v0 }
  0xcb   : > { %775 = vmatmul.mubr.bf16.gmra.mrb[8].mxu0 %v1343_v1  ;;  %815 = vmatmul.mubr.bf16.gmra.mrb[8].mxu1 %v1344_v2 }
  0xcc   : > { %784 = vmatprep.mubr.bf16.mxu0 %v1435_v0  ;;  %824 = vmatprep.mubr.bf16.mxu1 %v1435_v0  ;;  %v1622_v0 = vpop.permute.xlu0 %546 }
  0xd0   : > { %v557_v12 = vpop.permute.xlu0 %556 }
  0xd3   : > { %785 = vmatmul.mubr.bf16.gmra.mrb[12].mxu0 %v1345_v3  ;;  %825 = vmatmul.mubr.bf16.gmra.mrb[12].mxu1 %v1346_v4 }
  0xd4   : > { %v567_v4 = vpop.permute.xlu0 %566 }
 0x18e   : > { %v756_v13 = vpop.f32.mrb[0].mxu0  ;;  %v796_v14 = vpop.f32.mrb[0].mxu1 }
 0x18f   : > { %v757_v15 = vadd.f32 %v756_v13, %v517_v5  ;;  %v797_v16 = vadd.f32 %v796_v14, %v557_v12  ;;  %v758_v17 = vpop.f32.mrb[1].mxu0  ;;  %v798_v18 = vpop.f32.mrb[1].mxu1 }
 0x190   : > { %v1626_v19 = vadd.f32 %v758_v17, %v517_v5  ;;  %v1628_v20 = vadd.f32 %v798_v18, %v557_v12  ;;  %v760_v21 = vpop.f32.mrb[2].mxu0  ;;  %v800_v22 = vpop.f32.mrb[2].mxu1 }
 0x191   : > { %v867_v23 = vmul.f32 0.044715, %v757_v15  ;;  %v883_v24 = vmul.f32 0.044715, %v797_v16  ;;  %v1632_v30 = vadd.f32 %v760_v21, %v522_v6  ;;  %v1634_v31 = vadd.f32 %v800_v22, %v562_v25  ;;  %v762_v32 = vpop.f32.mrb[3].mxu0  ;;  %v802_v33 = vpop.f32.mrb[3].mxu1 }
 0x192   : > { %v868_v26 = vmul.f32 0.044715, %v1626_v19  ;;  %v884_v27 = vmul.f32 0.044715, %v1628_v20  ;;  %v1638_v36 = vadd.f32 %v762_v32, %v522_v6  ;;  %v1645_v48 = vadd.f32 %v802_v33, %v562_v25 }
 0x193   : > { %v899_v28 = vmul.f32 %v867_v23, %v757_v15  ;;  %v915_v29 = vmul.f32 %v883_v24, %v797_v16  ;;  %v869_v39 = vmul.f32 0.044715, %v1632_v30  ;;  %v885_v42 = vmul.f32 0.044715, %v1634_v31 }
 0x194   : > { %v900_v34 = vmul.f32 %v868_v26, %v1626_v19  ;;  %v916_v35 = vmul.f32 %v884_v27, %v1628_v20  ;;  %v870_v56 = vmul.f32 0.044715, %v1638_v36  ;;  %v1653_v49 = vmul.f32 0.5, %v757_v15 }
 0x195   : > { %v931_v37 = vmul.f32 %v899_v28, %v757_v15  ;;  %v947_v38 = vmul.f32 %v915_v29, %v797_v16  ;;  %v901_v47 = vmul.f32 %v869_v39, %v1632_v30  ;;  %v917_v55 = vmul.f32 %v885_v42, %v1634_v31 }
 0x196   : > { %v932_v40 = vmul.f32 %v900_v34, %v1626_v19  ;;  %v948_v41 = vmul.f32 %v916_v35, %v1628_v20  ;;  %v766_v43 = vpop.f32.mrb[4].mxu0  ;;  %v806_v44 = vpop.f32.mrb[4].mxu1  ;;  %v902_v2 = vmul.f32 %v870_v56, %v1638_v36  ;;  %v886_v6 = vmul.f32 0.044715, %v1645_v48 }
 0x197   : > { %v963_v45 = vadd.f32 %v931_v37, %v757_v15  ;;  %v979_v46 = vadd.f32 %v947_v38, %v797_v16  ;;  %v768_v51 = vpop.f32.mrb[5].mxu0  ;;  %v808_v52 = vpop.f32.mrb[5].mxu1  ;;  %v933_v60 = vmul.f32 %v901_v47, %v1632_v30  ;;  %v949_v1 = vmul.f32 %v917_v55, %v1634_v31 }
 0x198   : > { %v964_v53 = vadd.f32 %v932_v40, %v1626_v19  ;;  %v980_v54 = vadd.f32 %v948_v41, %v1628_v20  ;;  %v770_v57 = vpop.f32.mrb[6].mxu0  ;;  %v1651_v58 = vpop.f32.mrb[6].mxu1  ;;  %v1665_v12 = vadd.f32 %v766_v43, %v1614_v7  ;;  %v934_v14 = vmul.f32 %v902_v2, %v1638_v36 }
 0x199   : > { %v995_v59 = vmul.f32 0.7978846, %v963_v45  ;;  %v1011_v50 = vmul.f32 0.7978846, %v979_v46  ;;  %v1656_v61 = vpop.f32.mrb[7].mxu0  ;;  %v1660_v3 = vpop.f32.mrb[7].mxu1  ;;  %v965_v5 = vadd.f32 %v933_v60, %v1632_v30  ;;  %v981_v13 = vadd.f32 %v949_v1, %v1634_v31 }
 0x19a   : > { %v996_v62 = vmul.f32 0.7978846, %v964_v53  ;;  %v1012_v63 = vmul.f32 0.7978846, %v980_v54  ;;  %v1669_v15 = vadd.f32 %v806_v44, %v567_v4  ;;  %v1671_v17 = vmul.f32 0.5, %v797_v16 }
 0x19b   : > { %1347 = vtanh.f32 %v995_v59  ;;  %v997_v18 = vmul.f32 0.7978846, %v965_v5  ;;  %v918_v21 = vmul.f32 %v886_v6, %v1645_v48  ;;  %v1013_v22 = vmul.f32 0.7978846, %v981_v13 }
 0x19c   : > { %1349 = vtanh.f32 %v1011_v50  ;;  %v966_v23 = vadd.f32 %v934_v14, %v1638_v36  ;;  %v871_v24 = vmul.f32 0.044715, %v1665_v12  ;;  %v1681_v27 = vmul.f32 0.5, %v1626_v19 }
 0x19d   : > { %1351 = vtanh.f32 %v996_v62  ;;  %v950_v16 = vmul.f32 %v918_v21, %v1645_v48  ;;  %v887_v28 = vmul.f32 0.044715, %v1669_v15  ;;  %v1691_v35 = vadd.f32 %v768_v51, %v1614_v7 }
 0x19e   : > { %1353 = vtanh.f32 %v1012_v63  ;;  %v1676_v25 = vpop.f32.mrb[8].mxu0  ;;  %v1678_v26 = vpop.f32.mrb[8].mxu1  ;;  %v998_v33 = vmul.f32 0.7978846, %v966_v23  ;;  %v903_v34 = vmul.f32 %v871_v24, %v1665_v12  ;;  %v1699_v40 = vadd.f32 %v808_v52, %v567_v4 }
 0x19f   : > { %1355 = vtanh.f32 %v997_v18  ;;  %v1685_v29 = vpop.f32.mrb[9].mxu0  ;;  %v1687_v32 = vpop.f32.mrb[9].mxu1  ;;  %v982_v38 = vadd.f32 %v950_v16, %v1645_v48  ;;  %v919_v39 = vmul.f32 %v887_v28, %v1669_v15  ;;  %v1702_v41 = vadd.f32 %v770_v57, %v1616_v8 }
 0x1a0   : > { %1357 = vtanh.f32 %v1013_v22  ;;  %v1693_v37 = vpop.f32.mrb[10].mxu0  ;;  %v1695_v19 = vpop.f32.mrb[10].mxu1  ;;  %v852_v7 = vmul.f32 0.5, %v1628_v20  ;;  %v935_v44 = vmul.f32 %v903_v34, %v1665_v12  ;;  %v872_v45 = vmul.f32 0.044715, %v1691_v35 }
 0x1a1   : > { %v1704_v42 = vpop.f32.mrb[11].mxu0  ;;  %v1706_v43 = vpop.f32.mrb[11].mxu1  ;;  %1359 = vtanh.f32 %v998_v33  ;;  %v837_v46 = vmul.f32 0.5, %v1632_v30  ;;  %v1014_v47 = vmul.f32 0.7978846, %v982_v38  ;;  %v951_v51 = vmul.f32 %v919_v39, %v1669_v15 }
 0x1a2   : > { %v888_v52 = vmul.f32 0.044715, %v1699_v40  ;;  %v853_v53 = vmul.f32 0.5, %v1634_v31  ;;  %v967_v54 = vadd.f32 %v935_v44, %v1665_v12  ;;  %v904_v55 = vmul.f32 %v872_v45, %v1691_v35  ;;  %v572_v57 = vpop.permute.xlu1 %571 }
 0x1a3   : > { %v873_v20 = vmul.f32 0.044715, %v1702_v41  ;;  %v1720_v59 = vmul.f32 0.5, %v1638_v36  ;;  %1361 = vtanh.f32 %v1014_v47  ;;  %v983_v30 = vadd.f32 %v951_v51, %v1669_v15 }
 0x1a4   : > { %v920_v50 = vmul.f32 %v888_v52, %v1699_v40  ;;  %v999_v63 = vmul.f32 0.7978846, %v967_v54  ;;  %v936_v31 = vmul.f32 %v904_v55, %v1691_v35  ;;  %v1737_v14 = vadd.f32 %v1651_v58, %v572_v57 }
 0x1a5   : > { %v1348_v56 = vpop.eup %1347  ;;  %v905_v1 = vmul.f32 %v873_v20, %v1702_v41  ;;  %v1015_v6 = vmul.f32 0.7978846, %v983_v30 }
 0x1a6   : > { %v1350_v60 = vpop.eup %1349  ;;  %v1059_v62 = vadd.f32 1.0, %v1348_v56  ;;  %v1726_v2 = vpop.f32.mrb[12].mxu0  ;;  %v952_v13 = vmul.f32 %v920_v50, %v1699_v40  ;;  %1363 = vtanh.f32 %v999_v63  ;;  %v968_v16 = vadd.f32 %v936_v31, %v1691_v35 }
 0x1a7   : > { %v1728_v4 = vpop.f32.mrb[12].mxu1  ;;  %v1352_v5 = vpop.eup %1351  ;;  %v1075_v36 = vadd.f32 1.0, %v1350_v60  ;;  %1365 = vtanh.f32 %v1015_v6  ;;  %v937_v54 = vmul.f32 %v905_v1, %v1702_v41  ;;  %v889_v56 = vmul.f32 0.044715, %v1737_v14 }
 0x1a8   : > { %v1739_v18 = vpop.f32.mrb[13].mxu0  ;;  %v1741_v21 = vpop.f32.mrb[13].mxu1  ;;  %v1091_v23 = vmul.f32 %v1059_v62, %v1653_v49  ;;  %v1060_v24 = vadd.f32 1.0, %v1352_v5  ;;  %v984_v39 = vadd.f32 %v952_v13, %v1699_v40  ;;  %v1000_v52 = vmul.f32 0.7978846, %v968_v16 }
 0x1a9   : > { %v1354_v22 = vpop.eup %1353  ;;  %v1745_v28 = vpop.f32.mrb[14].mxu0  ;;  %v1107_v58 = vmul.f32 %v1075_v36, %v1671_v17  ;;  %v969_v60 = vadd.f32 %v937_v54, %v1702_v41  ;;  %v854_v1 = vmul.f32 0.5, %v1645_v48  ;;  %v1772_v36 = vadd.f32 %v1660_v3, %v572_v57 }
 0x1aa   : > { %v1747_v33 = vpop.f32.mrb[14].mxu1  ;;  %v1356_v34 = vpop.eup %1355  ;;  %v1076_v38 = vadd.f32 1.0, %v1354_v22  ;;  %1123 = vst [vmem:[%s1733_s7] sm:$0xff] %v1091_v23  ;;  %v1092_v47 = vmul.f32 %v1060_v24, %v1681_v27  ;;  %v1016_v20 = vmul.f32 0.7978846, %v984_v39  ;;  %1367 = vtanh.f32 %v1000_v52 }
 0x1ab   : > { %v1751_v44 = vpop.f32.mrb[15].mxu0  ;;  %v1753_v49 = vpop.f32.mrb[15].mxu1  ;;  %v1061_v51 = vadd.f32 1.0, %v1356_v34  ;;  %1139 = vst [vmem:[%s1733_s7 + $0x80] sm:$0xff] %v1107_v58  ;;  %v1764_v27 = vadd.f32 %v1656_v61, %v1616_v8  ;;  %v839_v22 = vmul.f32 0.5, %v1665_v12  ;;  %v855_v57 = vmul.f32 0.5, %v1669_v15 }
 0x1ac   : > { %v1358_v45 = vpop.eup %1357  ;;  %v1108_v17 = vmul.f32 %v1076_v38, %v852_v7  ;;  %1124 = vst [vmem:[%s1733_s7 + $0x8] sm:$0xff] %v1092_v47  ;;  %1369 = vtanh.f32 %v1016_v20  ;;  %v921_v7 = vmul.f32 %v889_v56, %v1737_v14  ;;  %v577_v31 = vpop.permute.xlu0 %576  ;;  %v890_v23 = vmul.f32 0.044715, %v1772_v36 }
 0x1ad   : > { %v1077_v55 = vadd.f32 1.0, %v1358_v45  ;;  %v1360_v30 = vpop.eup %1359  ;;  %v1093_v50 = vmul.f32 %v1061_v51, %v837_v46  ;;  %v1001_v46 = vmul.f32 0.7978846, %v969_v60  ;;  %v874_v5 = vmul.f32 0.044715, %v1764_v27 }
 0x1ae   : > { %1140 = vst [vmem:[%s1733_s7 + $0x88] sm:$0xff] %v1108_v17  ;;  %v1062_v63 = vadd.f32 1.0, %v1360_v30  ;;  %v1362_v6 = vpop.eup %1361  ;;  %v953_v61 = vmul.f32 %v921_v7, %v1737_v14  ;;  %v1782_v13 = vadd.f32 %v1678_v26, %v577_v31  ;;  %v840_v26 = vmul.f32 0.5, %v1691_v35 }
 0x1af   : > { %v1109_v62 = vmul.f32 %v1077_v55, %v853_v53  ;;  %1125 = vst [vmem:[%s1733_s7 + $0x10] sm:$0xff] %v1093_v50  ;;  %v1779_v53 = vadd.f32 %v1676_v25, %v1618_v9  ;;  %v1078_v48 = vadd.f32 1.0, %v1362_v6  ;;  %1371 = vtanh.f32 %v1001_v46 }
 0x1b0   : > { %v1094_v8 = vmul.f32 %v1062_v63, %v1720_v59  ;;  %v906_v3 = vmul.f32 %v874_v5, %v1764_v27  ;;  %v985_v59 = vadd.f32 %v953_v61, %v1737_v14  ;;  %v1364_v24 = vpop.eup %1363  ;;  %v891_v12 = vmul.f32 0.044715, %v1782_v13 }
 0x1b1   : > { %1141 = vst [vmem:[%s1733_s7 + $0x90] sm:$0xff] %v1109_v62  ;;  %v875_v25 = vmul.f32 0.044715, %v1779_v53  ;;  %v1110_v16 = vmul.f32 %v1078_v48, %v854_v1  ;;  %v1366_v58 = vpop.eup %1365  ;;  %v1063_v38 = vadd.f32 1.0, %v1364_v24  ;;  %v922_v45 = vmul.f32 %v890_v23, %v1772_v36  ;;  %v582_v23 = vpop.permute.xlu1 %581 }
 0x1b2   : > { %1126 = vst [vmem:[%s1733_s7 + $0x18] sm:$0xff] %v1094_v8  ;;  %v938_v34 = vmul.f32 %v906_v3, %v1764_v27  ;;  %v1017_v39 = vmul.f32 0.7978846, %v985_v59  ;;  %v1079_v47 = vadd.f32 1.0, %v1366_v58  ;;  %v923_v52 = vmul.f32 %v891_v12, %v1782_v13 }
 0x1b3   : > { %v907_v15 = vmul.f32 %v875_v25, %v1779_v53  ;;  %1142 = vst [vmem:[%s1733_s7 + $0x98] sm:$0xff] %v1110_v16  ;;  %v1801_v35 = vadd.f32 %v1685_v29, %v1618_v9  ;;  %v1095_v54 = vmul.f32 %v1063_v38, %v839_v22  ;;  %v954_v17 = vmul.f32 %v922_v45, %v1772_v36 }
 0x1b4   : > { %v970_v51 = vadd.f32 %v938_v34, %v1764_v27  ;;  %1373 = vtanh.f32 %v1017_v39  ;;  %v1368_v20 = vpop.eup %1367  ;;  %v1111_v56 = vmul.f32 %v1079_v47, %v855_v57  ;;  %v856_v30 = vmul.f32 0.5, %v1699_v40 }
 0x1b5   : > { %v939_v55 = vmul.f32 %v907_v15, %v1779_v53  ;;  %v955_v60 = vmul.f32 %v923_v52, %v1782_v13  ;;  %1127 = vst [vmem:[%s1733_s7 + $0x20] sm:$0xff] %v1095_v54  ;;  %v1064_v63 = vadd.f32 1.0, %v1368_v20  ;;  %v986_v9 = vadd.f32 %v954_v17, %v1772_v36 }
 0x1b6   : > { %v1002_v50 = vmul.f32 0.7978846, %v970_v51  ;;  %v1370_v62 = vpop.eup %1369  ;;  %v876_v7 = vmul.f32 0.044715, %v1801_v35  ;;  %1143 = vst [vmem:[%s1733_s7 + $0xa0] sm:$0xff] %v1111_v56  ;;  %v1814_v40 = vadd.f32 %v1687_v32, %v577_v31  ;;  %v841_v3 = vmul.f32 0.5, %v1702_v41 }
 0x1b7   : > { %v971_v29 = vadd.f32 %v939_v55, %v1779_v53  ;;  %v1080_v1 = vadd.f32 1.0, %v1370_v62  ;;  %v987_v46 = vadd.f32 %v955_v60, %v1782_v13  ;;  %v1096_v5 = vmul.f32 %v1064_v63, %v840_v26 }
 0x1b8   : > { %1375 = vtanh.f32 %v1002_v50  ;;  %v1018_v6 = vmul.f32 0.7978846, %v986_v9  ;;  %v908_v61 = vmul.f32 %v876_v7, %v1801_v35  ;;  %v892_v59 = vmul.f32 0.044715, %v1814_v40 }
 0x1b9   : > { %v1003_v8 = vmul.f32 0.7978846, %v971_v29  ;;  %v1372_v48 = vpop.eup %1371  ;;  %v1112_v22 = vmul.f32 %v1080_v1, %v856_v30  ;;  %v1019_v57 = vmul.f32 0.7978846, %v987_v46  ;;  %1128 = vst [vmem:[%s1733_s7 + $0x28] sm:$0xff] %v1096_v5  ;;  %v1823_v31 = vadd.f32 %v1693_v37, %v1620_v10  ;;  %v587_v30 = vpop.permute.xlu0 %586 }
 0x1ba   : > { %v1065_v25 = vadd.f32 1.0, %v1372_v48  ;;  %1377 = vtanh.f32 %v1018_v6  ;;  %v940_v32 = vmul.f32 %v908_v61, %v1801_v35  ;;  %v924_v24 = vmul.f32 %v892_v59, %v1814_v40 }
 0x1bb   : > { %1144 = vst [vmem:[%s1733_s7 + $0xa8] sm:$0xff] %v1112_v22  ;;  %1379 = vtanh.f32 %v1003_v8  ;;  %v1828_v41 = vadd.f32 %v1695_v19, %v582_v23  ;;  %v1832_v16 = vadd.f32 %v1704_v42, %v1620_v10  ;;  %v857_v34 = vmul.f32 0.5, %v1737_v14 }
 0x1bc   : > { %v1097_v26 = vmul.f32 %v1065_v25, %v841_v3  ;;  %1381 = vtanh.f32 %v1019_v57  ;;  %v972_v12 = vadd.f32 %v940_v32, %v1801_v35  ;;  %v842_v37 = vmul.f32 0.5, %v1764_v27 }
 0x1bd   : > { %v956_v58 = vmul.f32 %v924_v24, %v1814_v40  ;;  %v877_v38 = vmul.f32 0.044715, %v1823_v31  ;;  %v893_v39 = vmul.f32 0.044715, %v1828_v41  ;;  %v858_v45 = vmul.f32 0.5, %v1772_v36 }
 0x1be   : > { %v1374_v19 = vpop.eup %1373  ;;  %1129 = vst [vmem:[%s1733_s7 + $0x30] sm:$0xff] %v1097_v26  ;;  %v1004_v10 = vmul.f32 0.7978846, %v972_v12  ;;  %v878_v42 = vmul.f32 0.044715, %v1832_v16  ;;  %v1844_v14 = vadd.f32 %v1706_v43, %v582_v23  ;;  %v843_v52 = vmul.f32 0.5, %v1779_v53 }
 0x1bf   : > { %v1081_v15 = vadd.f32 1.0, %v1374_v19  ;;  %v988_v47 = vadd.f32 %v956_v58, %v1814_v40  ;;  %v909_v27 = vmul.f32 %v877_v38, %v1823_v31  ;;  %v925_v51 = vmul.f32 %v893_v39, %v1828_v41 }
 0x1c0   : > { %1383 = vtanh.f32 %v1004_v10  ;;  %v910_v54 = vmul.f32 %v878_v42, %v1832_v16  ;;  %v894_v36 = vmul.f32 0.044715, %v1844_v14  ;;  %v1858_v53 = vadd.f32 %v1726_v2, %v1622_v0 }
 0x1c1   : > { %v1113_v55 = vmul.f32 %v1081_v15, %v857_v34  ;;  %v1020_v20 = vmul.f32 0.7978846, %v988_v47  ;;  %v941_v43 = vmul.f32 %v909_v27, %v1823_v31  ;;  %v957_v56 = vmul.f32 %v925_v51, %v1828_v41 }
 0x1c2   : > { %v1376_v17 = vpop.eup %1375  ;;  %v942_v60 = vmul.f32 %v910_v54, %v1832_v16  ;;  %v926_v62 = vmul.f32 %v894_v36, %v1844_v14  ;;  %v1864_v29 = vadd.f32 %v1728_v4, %v587_v30  ;;  %v859_v46 = vmul.f32 0.5, %v1782_v13 }
 0x1c3   : > { %v1066_v50 = vadd.f32 1.0, %v1376_v17  ;;  %1145 = vst [vmem:[%s1733_s7 + $0xb0] sm:$0xff] %v1113_v55  ;;  %1385 = vtanh.f32 %v1020_v20  ;;  %v973_v63 = vadd.f32 %v941_v43, %v1823_v31  ;;  %v989_v9 = vadd.f32 %v957_v56, %v1828_v41 }
 0x1c4   : > { %v1378_v7 = vpop.eup %1377  ;;  %v974_v5 = vadd.f32 %v942_v60, %v1832_v16  ;;  %v958_v6 = vmul.f32 %v926_v62, %v1844_v14  ;;  %v844_v61 = vmul.f32 0.5, %v1801_v35  ;;  %v879_v13 = vmul.f32 0.044715, %v1858_v53 }
 0x1c5   : > { %v1098_v1 = vmul.f32 %v1066_v50, %v842_v37  ;;  %v1380_v2 = vpop.eup %1379  ;;  %v1082_v8 = vadd.f32 1.0, %v1378_v7  ;;  %v1005_v48 = vmul.f32 0.7978846, %v973_v63  ;;  %v1021_v22 = vmul.f32 0.7978846, %v989_v9 }
 0x1c6   : > { %v1382_v3 = vpop.eup %1381  ;;  %v1067_v57 = vadd.f32 1.0, %v1380_v2  ;;  %v1006_v4 = vmul.f32 0.7978846, %v974_v5  ;;  %v990_v59 = vadd.f32 %v958_v6, %v1844_v14  ;;  %v895_v32 = vmul.f32 0.044715, %v1864_v29 }
 0x1c7   : > { %1130 = vst [vmem:[%s1733_s7 + $0x38] sm:$0xff] %v1098_v1  ;;  %v1114_v23 = vmul.f32 %v1082_v8, %v858_v45  ;;  %v1083_v25 = vadd.f32 1.0, %v1382_v3  ;;  %1387 = vtanh.f32 %v1005_v48  ;;  %v911_v26 = vmul.f32 %v879_v13, %v1858_v53 }
 0x1c8   : > { %v1099_v24 = vmul.f32 %v1067_v57, %v843_v52  ;;  %1389 = vtanh.f32 %v1021_v22  ;;  %v1022_v35 = vmul.f32 0.7978846, %v990_v59  ;;  %v927_v12 = vmul.f32 %v895_v32, %v1864_v29 }
 0x1c9   : > { %1146 = vst [vmem:[%s1733_s7 + $0xb8] sm:$0xff] %v1114_v23  ;;  %v1115_v34 = vmul.f32 %v1083_v25, %v859_v46  ;;  %1391 = vtanh.f32 %v1006_v4  ;;  %v1879_v37 = vadd.f32 %v1739_v18, %v1622_v0  ;;  %v943_v38 = vmul.f32 %v911_v26, %v1858_v53 }
 0x1ca   : > { %v1384_v58 = vpop.eup %1383  ;;  %1131 = vst [vmem:[%s1733_s7 + $0x40] sm:$0xff] %v1099_v24  ;;  %1393 = vtanh.f32 %v1022_v35  ;;  %v1884_v39 = vadd.f32 %v1741_v21, %v587_v30  ;;  %v1888_v19 = vadd.f32 %v1745_v28, %v1624_v11  ;;  %v860_v10 = vmul.f32 0.5, %v1814_v40  ;;  %v592_v28 = vpop.permute.xlu1 %591 }
 0x1cb   : > { %1147 = vst [vmem:[%s1733_s7 + $0xc0] sm:$0xff] %v1115_v34  ;;  %v1068_v45 = vadd.f32 1.0, %v1384_v58  ;;  %v959_v42 = vmul.f32 %v927_v12, %v1864_v29  ;;  %v880_v0 = vmul.f32 0.044715, %v1879_v37  ;;  %v845_v18 = vmul.f32 0.5, %v1823_v31 }
 0x1cc   : > { %v861_v15 = vmul.f32 0.5, %v1828_v41  ;;  %v975_v21 = vadd.f32 %v943_v38, %v1858_v53  ;;  %v896_v47 = vmul.f32 0.044715, %v1884_v39  ;;  %v881_v54 = vmul.f32 0.044715, %v1888_v19 }
 0x1cd   : > { %v1386_v27 = vpop.eup %1385  ;;  %v1100_v51 = vmul.f32 %v1068_v45, %v844_v61  ;;  %v991_v52 = vadd.f32 %v959_v42, %v1864_v29  ;;  %v912_v40 = vmul.f32 %v880_v0, %v1879_v37  ;;  %v1903_v31 = vadd.f32 %v1747_v33, %v592_v28 }
 0x1ce   : > { %v1084_v36 = vadd.f32 1.0, %v1386_v27  ;;  %v1007_v17 = vmul.f32 0.7978846, %v975_v21  ;;  %v928_v55 = vmul.f32 %v896_v47, %v1884_v39  ;;  %v913_v43 = vmul.f32 %v881_v54, %v1888_v19 }
 0x1cf   : > { %1132 = vst [vmem:[%s1733_s7 + $0x48] sm:$0xff] %v1100_v51  ;;  %v1023_v41 = vmul.f32 0.7978846, %v991_v52  ;;  %v944_v20 = vmul.f32 %v912_v40, %v1879_v37  ;;  %v1910_v56 = vadd.f32 %v1751_v44, %v1624_v11  ;;  %v846_v50 = vmul.f32 0.5, %v1832_v16 }
 0x1d0   : > { %v1116_v30 = vmul.f32 %v1084_v36, %v860_v10  ;;  %1395 = vtanh.f32 %v1007_v17  ;;  %v960_v60 = vmul.f32 %v928_v55, %v1884_v39  ;;  %v945_v63 = vmul.f32 %v913_v43, %v1888_v19 }
 0x1d1   : > { %v1388_v62 = vpop.eup %1387  ;;  %1397 = vtanh.f32 %v1023_v41  ;;  %v976_v33 = vadd.f32 %v944_v20, %v1879_v37  ;;  %v897_v9 = vmul.f32 0.044715, %v1903_v31  ;;  %v862_v11 = vmul.f32 0.5, %v1844_v14 }
 0x1d2   : > { %v1390_v7 = vpop.eup %1389  ;;  %1148 = vst [vmem:[%s1733_s7 + $0xc8] sm:$0xff] %v1116_v30  ;;  %v1069_v1 = vadd.f32 1.0, %v1388_v62  ;;  %v992_v44 = vadd.f32 %v960_v60, %v1884_v39  ;;  %v882_v16 = vmul.f32 0.044715, %v1910_v56  ;;  %v977_v2 = vadd.f32 %v945_v63, %v1888_v19 }
 0x1d3   : > { %v1392_v46 = vpop.eup %1391  ;;  %v1085_v5 = vadd.f32 1.0, %v1390_v7  ;;  %v1008_v6 = vmul.f32 0.7978846, %v976_v33  ;;  %v929_v8 = vmul.f32 %v897_v9, %v1903_v31  ;;  %v833_v24 = vadd.f32 %v1753_v49, %v592_v28 }
 0x1d4   : > { %v1394_v61 = vpop.eup %1393  ;;  %v1101_v48 = vmul.f32 %v1069_v1, %v845_v18  ;;  %v1070_v22 = vadd.f32 1.0, %v1392_v46  ;;  %v1024_v3 = vmul.f32 0.7978846, %v992_v44  ;;  %v914_v14 = vmul.f32 %v882_v16, %v1910_v56 }
 0x1d5   : > { %v1117_v57 = vmul.f32 %v1085_v5, %v861_v15  ;;  %v1086_v4 = vadd.f32 1.0, %v1394_v61  ;;  %1399 = vtanh.f32 %v1008_v6  ;;  %v1009_v59 = vmul.f32 0.7978846, %v977_v2 }
 0x1d6   : > { %1133 = vst [vmem:[%s1733_s7 + $0x50] sm:$0xff] %v1101_v48  ;;  %v1102_v13 = vmul.f32 %v1070_v22, %v846_v50  ;;  %1401 = vtanh.f32 %v1024_v3  ;;  %v961_v23 = vmul.f32 %v929_v8, %v1903_v31  ;;  %v946_v25 = vmul.f32 %v914_v14, %v1910_v56 }
 0x1d7   : > { %1149 = vst [vmem:[%s1733_s7 + $0xd0] sm:$0xff] %v1117_v57  ;;  %v1118_v32 = vmul.f32 %v1086_v4, %v862_v11  ;;  %1403 = vtanh.f32 %v1009_v59  ;;  %v898_v34 = vmul.f32 0.044715, %v833_v24  ;;  %v847_v10 = vmul.f32 0.5, %v1858_v53 }
 0x1d8   : > { %1134 = vst [vmem:[%s1733_s7 + $0x58] sm:$0xff] %v1102_v13  ;;  %v993_v35 = vadd.f32 %v961_v23, %v1903_v31  ;;  %v978_v26 = vadd.f32 %v946_v25, %v1910_v56  ;;  %v863_v18 = vmul.f32 0.5, %v1864_v29  ;;  %v848_v53 = vmul.f32 0.5, %v1879_v37 }
 0x1d9   : > { %1150 = vst [vmem:[%s1733_s7 + $0xd8] sm:$0xff] %v1118_v32  ;;  %v930_v0 = vmul.f32 %v898_v34, %v833_v24  ;;  %v864_v29 = vmul.f32 0.5, %v1884_v39  ;;  %v849_v55 = vmul.f32 0.5, %v1888_v19  ;;  %v865_v50 = vmul.f32 0.5, %v1903_v31 }
 0x1da   : > { %v1396_v12 = vpop.eup %1395  ;;  %v1025_v58 = vmul.f32 0.7978846, %v993_v35  ;;  %v1010_v38 = vmul.f32 0.7978846, %v978_v26  ;;  %v850_v60 = vmul.f32 0.5, %v1910_v56  ;;  %v866_v9 = vmul.f32 0.5, %v833_v24 }
 0x1db   : > { %v1398_v45 = vpop.eup %1397  ;;  %v1071_v42 = vadd.f32 1.0, %v1396_v12  ;;  %v962_v21 = vmul.f32 %v930_v0, %v833_v24 }
 0x1dc   : > { %v1087_v49 = vadd.f32 1.0, %v1398_v45  ;;  %1405 = vtanh.f32 %v1025_v58 }
 0x1dd   : > { %v1103_v15 = vmul.f32 %v1071_v42, %v847_v10  ;;  %1407 = vtanh.f32 %v1010_v38  ;;  %v994_v28 = vadd.f32 %v962_v21, %v833_v24 }
 0x1de   : > { %v1119_v47 = vmul.f32 %v1087_v49, %v863_v18 }
 0x1df   : > { %v1400_v27 = vpop.eup %1399  ;;  %1135 = vst [vmem:[%s1733_s7 + $0x60] sm:$0xff] %v1103_v15  ;;  %v1026_v36 = vmul.f32 0.7978846, %v994_v28 }
 0x1e0   : > { %v1402_v51 = vpop.eup %1401  ;;  %1151 = vst [vmem:[%s1733_s7 + $0xe0] sm:$0xff] %v1119_v47  ;;  %v1072_v52 = vadd.f32 1.0, %v1400_v27 }
 0x1e1   : > { %v1404_v40 = vpop.eup %1403  ;;  %v1088_v54 = vadd.f32 1.0, %v1402_v51  ;;  %1409 = vtanh.f32 %v1026_v36 }
 0x1e2   : > { %v1104_v17 = vmul.f32 %v1072_v52, %v848_v53  ;;  %v1073_v41 = vadd.f32 1.0, %v1404_v40 }
 0x1e3   : > { %v1120_v20 = vmul.f32 %v1088_v54, %v864_v29 }
 0x1e4   : > { %1136 = vst [vmem:[%s1733_s7 + $0x68] sm:$0xff] %v1104_v17  ;;  %v1105_v43 = vmul.f32 %v1073_v41, %v849_v55 }
 0x1e5   : > { %1152 = vst [vmem:[%s1733_s7 + $0xe8] sm:$0xff] %v1120_v20 }
 0x1e6   : > { %v1406_v30 = vpop.eup %1405  ;;  %1137 = vst [vmem:[%s1733_s7 + $0x70] sm:$0xff] %v1105_v43 }
 0x1e7   : > { %v1408_v37 = vpop.eup %1407  ;;  %v1089_v39 = vadd.f32 1.0, %v1406_v30 }
 0x1e8   : > { %v1074_v62 = vadd.f32 1.0, %v1408_v37 }
 0x1e9   : > { %v1121_v33 = vmul.f32 %v1089_v39, %v865_v50 }
 0x1ea   : > { %v1106_v19 = vmul.f32 %v1074_v62, %v850_v60 }
 0x1eb   : > { %1153 = vst [vmem:[%s1733_s7 + $0xf0] sm:$0xff] %v1121_v33  ;;  %v1410_v63 = vpop.eup %1409 }
 0x1ec   : > { %1138 = vst [vmem:[%s1733_s7 + $0x78] sm:$0xff] %v1106_v19  ;;  %v1090_v7 = vadd.f32 1.0, %v1410_v63 }
 0x1ee   : > { %v1122_v1 = vmul.f32 %v1090_v7, %v866_v9 }
 0x1f0   : > { %1154 = vst [vmem:[%s1733_s7 + $0xf8] sm:$0xff] %v1122_v1 }
 0x1f1 PF: > { %s14_s17 = sadd.s32 1, %s1433_s17   ;;  %s1962_s15 = smov %s1429_s16 }
 0x1f2   : > { %p11_p5 = scmp.ge.s32.totalorder %s14_s17, 4   ;;  %s1963_s16 = smov %s1965_s18 }
 0x1f4   :  { %13 = sbr.rel (!%p11_p5) target bundleno = 2 (0x2), region = 69 }

</bundles_post_ra>
